<compile_context>
chip_gen: v6e
topology: v6e:2x2x1
jax: 0.10.0
libtpu: 0.0.40
codegen_flags: <defaults>
</compile_context>

<pallas_src>
import functools

import jax
import jax.numpy as jnp
import numpy as np
from jax.experimental import pallas as pl
from jax.experimental.pallas import tpu as pltpu


def _softplus(x):
    # numerically-stable softplus (matches F.softplus)
    return jnp.maximum(x, 0.0) + jnp.log1p(jnp.exp(-jnp.abs(x)))


def _cnn_encoder_kernel(s_dim,
                        x_ref, wa0_ref, wa1_ref, b1_ref,
                        wb0_ref, wb1_ref, b2_ref,
                        wc0_ref, wc1_ref, b3_ref,
                        pm_ref, sel_ref, whr_ref, bh_ref,
                        h_ref, head_ref,
                        h1_s, h2_s):
    """One grid step = one block of B_blk samples.

    x_ref  : (N, 16*C)   input, 16 consecutive time steps packed per row
    wa*    : (16C, 8C)   conv1 banded weights (taps folded into contraction)
    wb*    : (8C, 8C)    conv2 banded weights
    wc*    : (8C, 4C)    conv3 banded weights
    pm_ref : (N-3, 4C)   pooling mask (1/L3 on valid (row, step-group) slots)
    sel_ref: (B_blk, N-3) 0/1 sample-membership matrix
    whr_ref: (4C, 2s)    group-replicated fused mu||var head weights
    h_ref  : (N, 4C)     conv3 output, 4 steps per row (lane-dense)
    head_ref: (B_blk, 2s) fused mu||var output
    """
    f32 = jnp.float32
    N = x_ref.shape[0]
    M1, M2, M3 = N - 1, N - 2, N - 3

    # ---- conv1 (C -> C, K=5, stride 2): 16 steps/row in, 8 steps/row out ---
    y = jnp.dot(x_ref[pl.ds(0, M1), :], wa0_ref[...], preferred_element_type=f32)
    y = y + jnp.dot(x_ref[pl.ds(1, M1), :], wa1_ref[...], preferred_element_type=f32)
    h1_s[pl.ds(0, M1), :] = jnp.maximum(y + b1_ref[...], 0.0).astype(h1_s.dtype)

    # ---- conv2 (C -> 2C, K=5, stride 2): 8 steps/row in, 4 steps/row out ---
    y = jnp.dot(h1_s[pl.ds(0, M2), :], wb0_ref[...], preferred_element_type=f32)
    y = y + jnp.dot(h1_s[pl.ds(1, M2), :], wb1_ref[...], preferred_element_type=f32)
    h2_s[pl.ds(0, M2), :] = jnp.maximum(y + b2_ref[...], 0.0).astype(h2_s.dtype)

    # ---- conv3 (2C -> C, K=5, stride 1): 4 steps/row -> 4*C lane-dense -----
    y = jnp.dot(h2_s[pl.ds(0, M3), :], wc0_ref[...], preferred_element_type=f32)
    y = y + jnp.dot(h2_s[pl.ds(1, M3), :], wc1_ref[...], preferred_element_type=f32)
    h3 = jnp.maximum(y + b3_ref[...], 0.0)                            # (M3, 4C)
    h_ref[pl.ds(0, M3), :] = h3.astype(h_ref.dtype)
    # rows >= M3 of h_ref are never read by the wrapper (S-slot invariant),
    # so no tail fill is issued.

    # ---- heads: masked mean over the L3 valid steps, fused mu||var ---------
    masked = h3 * pm_ref[...]                                         # (M3, 4C)
    sums = jnp.dot(sel_ref[...], masked, preferred_element_type=f32)  # (B_blk, 4C)
    lin = jnp.dot(sums, whr_ref[...], preferred_element_type=f32) + bh_ref[...]
    col = jax.lax.broadcasted_iota(jnp.int32, lin.shape, 1)
    head_ref[...] = jnp.where(col < s_dim, lin,
                              1e-6 + _softplus(lin)).astype(head_ref.dtype)


def _banded(w, p_in, p_out, stride, offset):
    """w: (K, Cin, Cout) conv taps.  Returns (p_in*Cin, p_out*Cout) where
    block (i, o) = w[i + offset - stride*o] when that tap index is in [0, K)."""
    K, Cin, Cout = w.shape
    zero = jnp.zeros((Cin, Cout), w.dtype)
    rows = []
    for i in range(p_in):
        blocks = []
        for o in range(p_out):
            j = i + offset - stride * o
            blocks.append(w[j] if 0 <= j < K else zero)
        rows.append(jnp.concatenate(blocks, axis=1))
    return jnp.concatenate(rows, axis=0)


def cnn_encoder_forward(params, k, v, v_len, *, matmul_dtype=jnp.float32):
    """Matches CNNEncoder.forward(k, v, v_len).

    Returns (h [B, h_dim, L3], mu [B, s_dim], var [B, s_dim]).
    `k` and `v_len` do not affect the math (as in the PyTorch module).
    """
    del k, v_len
    B, L, C = v.shape
    K = 5
    s_dim = params["w_mu"].shape[1]
    L1 = (L - K) // 2 + 1
    L2 = (L1 - K) // 2 + 1
    L3 = L2 - K + 1
    if L1 < 1 or L2 < 1 or L3 < 1:
        raise ValueError("sequence too short for CNNEncoder")

    # per-sample row slots (16-step-packed domain): valid conv3 packed rows are
    # 0..R3v; their input chain reaches x rows up to R3v+3, so S >= R3v+4 keeps
    # every valid output inside its own sample's slots.
    R3v = (L3 - 1) // 4
    S = max(-(-L // 16), R3v + 4)

    # ---- batch blocking: >= 2 even blocks when possible, VMEM-capped -------
    per_sample_bytes = S * C * 4 * (2 * 16 + 2 * 8 + 2 * 4 + 4)
    max_bblk = max(1, int((24 * 2 ** 20) // per_sample_bytes))
    if B <= 1:
        n_blocks = 1
    else:
        n_blocks = min(B, 4)                          # engage pipeline + megacore
        n_blocks = max(n_blocks, -(-B // max_bblk))   # respect VMEM budget
        if n_blocks % 2 and n_blocks < B:
            n_blocks += 1                             # even block count for v7x
    B_blk = -(-B // n_blocks)
    B_pad = n_blocks * B_blk
    N = B_blk * S
    M3 = N - 3

    # ---- pack input: 16 consecutive time steps per row (free reshapes) -----
    v_pad = jnp.zeros((B_pad, 16 * S, C), matmul_dtype)
    v_pad = v_pad.at[:B, :L, :].set(v.astype(matmul_dtype))
    x16 = v_pad.reshape(n_blocks, N, 16 * C)

    # ---- block-banded conv weights (K=5 taps folded into contraction) ------
    w1 = params["w1"].astype(matmul_dtype)
    w2 = params["w2"].astype(matmul_dtype)
    w3 = params["w3"].astype(matmul_dtype)
    wa0 = _banded(w1, 16, 8, 2, 0)
    wa1 = _banded(w1, 16, 8, 2, 16)
    wb0 = _banded(w2, 8, 4, 2, 0)
    wb1 = _banded(w2, 8, 4, 2, 8)
    wc0 = _banded(w3, 4, 4, 1, 0)
    wc1 = _banded(w3, 4, 4, 1, 4)
    bb1 = jnp.tile(params["b1"].astype(jnp.float32), (1, 8))     # (1, 8C)
    bb2 = jnp.tile(params["b2"].astype(jnp.float32), (1, 4))     # (1, 8C)
    bb3 = jnp.tile(params["b3"].astype(jnp.float32), (1, 4))     # (1, 4C)

    # fused mu||var head; lane-group fold absorbed into the replicated weight
    wh = jnp.concatenate([params["w_mu"], params["w_var"]], axis=1)  # (C, 2s)
    whr = jnp.tile(wh.astype(jnp.float32), (4, 1))                   # (4C, 2s)
    bh = jnp.concatenate([params["b_mu"], params["b_var"]], axis=1)  # (1, 2s)

    # pooling mask / sample-selection matrices (shape-only, identical per block)
    r_in_s = np.arange(M3) % S
    step = r_in_s[:, None] * 4 + np.arange(4)[None, :]
    pm = np.where(step < L3, 1.0 / L3, 0.0).astype(np.float32)
    pm = jnp.asarray(np.repeat(pm, C, axis=1))                       # (M3, 4C)
    sel = jnp.asarray((np.arange(M3)[None, :] // S ==
                       np.arange(B_blk)[:, None]).astype(np.float32))  # (B_blk, M3)

    kernel = functools.partial(_cnn_encoder_kernel, s_dim)

    def const(a):
        nd = a.ndim
        return pl.BlockSpec(a.shape, lambda i, _nd=nd: (0,) * _nd)

    h_packed, head = pl.pallas_call(
        kernel,
        out_shape=(
            jax.ShapeDtypeStruct((n_blocks, N, 4 * C), jnp.float32),
            jax.ShapeDtypeStruct((n_blocks, B_blk, 2 * s_dim), jnp.float32),
        ),
        grid=(n_blocks,),
        in_specs=[
            pl.BlockSpec((None, N, 16 * C), lambda i: (i, 0, 0)),
            const(wa0), const(wa1), const(bb1),
            const(wb0), const(wb1), const(bb2),
            const(wc0), const(wc1), const(bb3),
            const(pm), const(sel), const(whr), const(bh),
        ],
        out_specs=(
            pl.BlockSpec((None, N, 4 * C), lambda i: (i, 0, 0)),
            pl.BlockSpec((None, B_blk, 2 * s_dim), lambda i: (i, 0, 0)),
        ),
        scratch_shapes=[
            pltpu.VMEM((N, 8 * C), matmul_dtype),   # conv1 output (8 steps/row)
            pltpu.VMEM((N, 8 * C), matmul_dtype),   # conv2 output (4 steps/row)
        ],
        compiler_params=pltpu.CompilerParams(
            dimension_semantics=("parallel",),       # megacore-shard batch blocks
            vmem_limit_bytes=48 * 1024 * 1024),      # v7x-safe explicit budget
    )(x16, wa0, wa1, bb1, wb0, wb1, bb2, wc0, wc1, bb3, pm, sel, whr, bh)

    # unpack: (n_blocks, N, 4C) -> (B_pad, 4S, C) -> valid steps -> NCL layout
    h = h_packed.reshape(B_pad, 4 * S, C)[:B, :L3, :]
    h = jnp.transpose(h, (0, 2, 1))                  # PyTorch NCL (B, h_dim, L3)
    head = head.reshape(B_pad, 2 * s_dim)
    mu = head[:B, :s_dim]
    var = head[:B, s_dim:]
    return h, mu, var


def init_params(key, h_dim, s_dim):
    """Deterministic synthetic parameters (same shapes as nn.Module __init__)."""
    ks = jax.random.split(key, 10)

    def wconv(kk, cin, cout, K=5):  # stored as (K, C_in, C_out)
        return 0.1 * jax.random.normal(kk, (K, cin, cout), jnp.float32)

    return {
        "w1": wconv(ks[0], h_dim, h_dim),
        "b1": 0.1 * jax.random.normal(ks[1], (1, h_dim), jnp.float32),
        "w2": wconv(ks[2], h_dim, 2 * h_dim),
        "b2": 0.1 * jax.random.normal(ks[3], (1, 2 * h_dim), jnp.float32),
        "w3": wconv(ks[4], 2 * h_dim, h_dim),
        "b3": 0.1 * jax.random.normal(ks[5], (1, h_dim), jnp.float32),
        "w_mu": 0.1 * jax.random.normal(ks[6], (h_dim, s_dim), jnp.float32),
        "b_mu": 0.1 * jax.random.normal(ks[7], (1, s_dim), jnp.float32),
        "w_var": 0.1 * jax.random.normal(ks[8], (h_dim, s_dim), jnp.float32),
        "b_var": 0.1 * jax.random.normal(ks[9], (1, s_dim), jnp.float32),
    }


def reference_forward(params, v):
    """Pure-JAX reference mirroring the PyTorch forward (for verification)."""
    x = jnp.transpose(v, (0, 2, 1))  # (B, C, L) — PyTorch NCL

    def conv(x_ncl, w_kic, b, stride):
        w_oik = jnp.transpose(w_kic, (2, 1, 0))  # (C_out, C_in, K)
        y = jax.lax.conv_general_dilated(
            x_ncl, w_oik, (stride,), "VALID",
            dimension_numbers=("NCH", "OIH", "NCH"))
        return jax.nn.relu(y + b[0][None, :, None])

    h = conv(x, params["w1"], params["b1"], 2)
    h = conv(h, params["w2"], params["b2"], 2)
    h = conv(h, params["w3"], params["b3"], 1)
    h_avg = jnp.mean(h, axis=-1)
    mu = h_avg @ params["w_mu"] + params["b_mu"][0]
    var = 1e-6 + jax.nn.softplus(h_avg @ params["w_var"] + params["b_var"][0])
    return h, mu, var


if __name__ == "__main__":
    B, L, h_dim, s_dim = 2, 48, 32, 16
    key = jax.random.PRNGKey(0)
    kp, kv, kk = jax.random.split(key, 3)

    params = init_params(kp, h_dim, s_dim)
    v = jax.random.normal(kv, (B, L, h_dim), jnp.float32)
    k = jax.random.normal(kk, (B, L, h_dim), jnp.float32)  # unused (as in PyTorch)
    v_len = jnp.full((B,), L, dtype=jnp.int32)              # unused (as in PyTorch)

    h, mu, var = cnn_encoder_forward(params, k, v, v_len)
    jax.block_until_ready((h, mu, var))

    h_ref, mu_ref, var_ref = reference_forward(params, v)
    np.testing.assert_allclose(np.asarray(h), np.asarray(h_ref), rtol=1e-4, atol=1e-4)
    np.testing.assert_allclose(np.asarray(mu), np.asarray(mu_ref), rtol=1e-4, atol=1e-4)
    np.testing.assert_allclose(np.asarray(var), np.asarray(var_ref), rtol=1e-4, atol=1e-4)

    print("KERNEL_OK")
</pallas_src>

<mosaic_0001>
module attributes {stable_mosaic.version = 11 : i64} {
  func.func @_cnn_encoder_kernel(%arg0: i32, %arg1: memref<1x5x512xf32, #tpu.memory_space<vmem>>, %arg2: memref<512x256xf32, #tpu.memory_space<vmem>>, %arg3: memref<512x256xf32, #tpu.memory_space<vmem>>, %arg4: memref<1x256xf32, #tpu.memory_space<vmem>>, %arg5: memref<256x256xf32, #tpu.memory_space<vmem>>, %arg6: memref<256x256xf32, #tpu.memory_space<vmem>>, %arg7: memref<1x256xf32, #tpu.memory_space<vmem>>, %arg8: memref<256x128xf32, #tpu.memory_space<vmem>>, %arg9: memref<256x128xf32, #tpu.memory_space<vmem>>, %arg10: memref<1x128xf32, #tpu.memory_space<vmem>>, %arg11: memref<2x128xf32, #tpu.memory_space<vmem>>, %arg12: memref<1x2xf32, #tpu.memory_space<vmem>>, %arg13: memref<128x32xf32, #tpu.memory_space<vmem>>, %arg14: memref<1x32xf32, #tpu.memory_space<vmem>>, %arg15: memref<1x5x128xf32, #tpu.memory_space<vmem>>, %arg16: memref<1x1x32xf32, #tpu.memory_space<vmem>>, %arg17: memref<5x256xf32, #tpu.memory_space<vmem>>, %arg18: memref<5x256xf32, #tpu.memory_space<vmem>>) attributes {dimension_semantics = [#tpu.dimension_semantics<parallel>], iteration_bounds = array<i64: 2>, scalar_prefetch = 0 : i64, scratch_operands = 2 : i64, tpu.core_type = #tpu.core_type<tc>, window_params = [{transform_indices = @transform_0, window_bounds = array<i64: 1, 5, 512>}, {pipeline_mode = #tpu.pipeline_mode<synchronous>, transform_indices = @transform_1, window_bounds = array<i64: 512, 256>}, {pipeline_mode = #tpu.pipeline_mode<synchronous>, transform_indices = @transform_2, window_bounds = array<i64: 512, 256>}, {pipeline_mode = #tpu.pipeline_mode<synchronous>, transform_indices = @transform_3, window_bounds = array<i64: 1, 256>}, {pipeline_mode = #tpu.pipeline_mode<synchronous>, transform_indices = @transform_4, window_bounds = array<i64: 256, 256>}, {pipeline_mode = #tpu.pipeline_mode<synchronous>, transform_indices = @transform_5, window_bounds = array<i64: 256, 256>}, {pipeline_mode = #tpu.pipeline_mode<synchronous>, transform_indices = @transform_6, window_bounds = array<i64: 1, 256>}, {pipeline_mode = #tpu.pipeline_mode<synchronous>, transform_indices = @transform_7, window_bounds = array<i64: 256, 128>}, {pipeline_mode = #tpu.pipeline_mode<synchronous>, transform_indices = @transform_8, window_bounds = array<i64: 256, 128>}, {pipeline_mode = #tpu.pipeline_mode<synchronous>, transform_indices = @transform_9, window_bounds = array<i64: 1, 128>}, {pipeline_mode = #tpu.pipeline_mode<synchronous>, transform_indices = @transform_10, window_bounds = array<i64: 2, 128>}, {pipeline_mode = #tpu.pipeline_mode<synchronous>, transform_indices = @transform_11, window_bounds = array<i64: 1, 2>}, {pipeline_mode = #tpu.pipeline_mode<synchronous>, transform_indices = @transform_12, window_bounds = array<i64: 128, 32>}, {pipeline_mode = #tpu.pipeline_mode<synchronous>, transform_indices = @transform_13, window_bounds = array<i64: 1, 32>}, {transform_indices = @transform_14, window_bounds = array<i64: 1, 5, 128>}, {transform_indices = @transform_15, window_bounds = array<i64: 1, 1, 32>}]} {
    %c0 = arith.constant 0 : index
    %c0_0 = arith.constant 0 : index
    %c0_1 = arith.constant 0 : index
    %0 = vector.load %arg1[%c0, %c0_0, %c0_1] : memref<1x5x512xf32, #tpu.memory_space<vmem>>, vector<1x4x512xf32>
    %1 = vector.shape_cast %0 : vector<1x4x512xf32> to vector<4x512xf32>
    %c0_2 = arith.constant 0 : index
    %c0_3 = arith.constant 0 : index
    %2 = vector.load %arg2[%c0_2, %c0_3] : memref<512x256xf32, #tpu.memory_space<vmem>>, vector<512x256xf32>
    %cst = arith.constant dense<0.000000e+00> : vector<4x256xf32>
    %3 = tpu.matmul %1, %2, %cst {dimension_numbers = #tpu.dot_dimension_numbers<[1], [0], [0], [1], [0, 0, 1, 1], [], []>} : vector<4x512xf32>, vector<512x256xf32>, vector<4x256xf32> -> vector<4x256xf32>
    %c0_4 = arith.constant 0 : index
    %c1 = arith.constant 1 : index
    %c0_5 = arith.constant 0 : index
    %4 = vector.load %arg1[%c0_4, %c1, %c0_5] : memref<1x5x512xf32, #tpu.memory_space<vmem>>, vector<1x4x512xf32>
    %5 = vector.shape_cast %4 : vector<1x4x512xf32> to vector<4x512xf32>
    %c0_6 = arith.constant 0 : index
    %c0_7 = arith.constant 0 : index
    %6 = vector.load %arg3[%c0_6, %c0_7] : memref<512x256xf32, #tpu.memory_space<vmem>>, vector<512x256xf32>
    %cst_8 = arith.constant dense<0.000000e+00> : vector<4x256xf32>
    %7 = tpu.matmul %5, %6, %cst_8 {dimension_numbers = #tpu.dot_dimension_numbers<[1], [0], [0], [1], [0, 0, 1, 1], [], []>} : vector<4x512xf32>, vector<512x256xf32>, vector<4x256xf32> -> vector<4x256xf32>
    %8 = arith.addf %3, %7 : vector<4x256xf32>
    %c0_9 = arith.constant 0 : index
    %c0_10 = arith.constant 0 : index
    %9 = vector.load %arg4[%c0_9, %c0_10] : memref<1x256xf32, #tpu.memory_space<vmem>>, vector<1x256xf32>
    %10 = vector.broadcast %9 : vector<1x256xf32> to vector<4x256xf32>
    %11 = arith.addf %8, %10 : vector<4x256xf32>
    %cst_11 = arith.constant 0.000000e+00 : f32
    %12 = vector.broadcast %cst_11 : f32 to vector<4x256xf32>
    %13 = arith.maximumf %11, %12 : vector<4x256xf32>
    %c0_12 = arith.constant 0 : index
    %c0_13 = arith.constant 0 : index
    %14 = vector.load %arg17[%c0_12, %c0_13] : memref<5x256xf32, #tpu.memory_space<vmem>>, vector<4x256xf32>
    tpu.vector_store %arg17[%c0_12, %c0_13], %13 {strides = array<i32>} : memref<5x256xf32, #tpu.memory_space<vmem>>, vector<4x256xf32>,
    %c0_14 = arith.constant 0 : index
    %c0_15 = arith.constant 0 : index
    %15 = vector.load %arg17[%c0_14, %c0_15] : memref<5x256xf32, #tpu.memory_space<vmem>>, vector<3x256xf32>
    %c0_16 = arith.constant 0 : index
    %c0_17 = arith.constant 0 : index
    %16 = vector.load %arg5[%c0_16, %c0_17] : memref<256x256xf32, #tpu.memory_space<vmem>>, vector<256x256xf32>
    %cst_18 = arith.constant dense<0.000000e+00> : vector<3x256xf32>
    %17 = tpu.matmul %15, %16, %cst_18 {dimension_numbers = #tpu.dot_dimension_numbers<[1], [0], [0], [1], [0, 0, 1, 1], [], []>} : vector<3x256xf32>, vector<256x256xf32>, vector<3x256xf32> -> vector<3x256xf32>
    %c1_19 = arith.constant 1 : index
    %c0_20 = arith.constant 0 : index
    %18 = vector.load %arg17[%c1_19, %c0_20] : memref<5x256xf32, #tpu.memory_space<vmem>>, vector<3x256xf32>
    %c0_21 = arith.constant 0 : index
    %c0_22 = arith.constant 0 : index
    %19 = vector.load %arg6[%c0_21, %c0_22] : memref<256x256xf32, #tpu.memory_space<vmem>>, vector<256x256xf32>
    %cst_23 = arith.constant dense<0.000000e+00> : vector<3x256xf32>
    %20 = tpu.matmul %18, %19, %cst_23 {dimension_numbers = #tpu.dot_dimension_numbers<[1], [0], [0], [1], [0, 0, 1, 1], [], []>} : vector<3x256xf32>, vector<256x256xf32>, vector<3x256xf32> -> vector<3x256xf32>
    %21 = arith.addf %17, %20 : vector<3x256xf32>
    %c0_24 = arith.constant 0 : index
    %c0_25 = arith.constant 0 : index
    %22 = vector.load %arg7[%c0_24, %c0_25] : memref<1x256xf32, #tpu.memory_space<vmem>>, vector<1x256xf32>
    %23 = vector.broadcast %22 : vector<1x256xf32> to vector<3x256xf32>
    %24 = arith.addf %21, %23 : vector<3x256xf32>
    %cst_26 = arith.constant 0.000000e+00 : f32
    %25 = vector.broadcast %cst_26 : f32 to vector<3x256xf32>
    %26 = arith.maximumf %24, %25 : vector<3x256xf32>
    %c0_27 = arith.constant 0 : index
    %c0_28 = arith.constant 0 : index
    %27 = vector.load %arg18[%c0_27, %c0_28] : memref<5x256xf32, #tpu.memory_space<vmem>>, vector<3x256xf32>
    tpu.vector_store %arg18[%c0_27, %c0_28], %26 {strides = array<i32>} : memref<5x256xf32, #tpu.memory_space<vmem>>, vector<3x256xf32>,
    %c0_29 = arith.constant 0 : index
    %c0_30 = arith.constant 0 : index
    %28 = vector.load %arg18[%c0_29, %c0_30] : memref<5x256xf32, #tpu.memory_space<vmem>>, vector<2x256xf32>
    %c0_31 = arith.constant 0 : index
    %c0_32 = arith.constant 0 : index
    %29 = vector.load %arg8[%c0_31, %c0_32] : memref<256x128xf32, #tpu.memory_space<vmem>>, vector<256x128xf32>
    %cst_33 = arith.constant dense<0.000000e+00> : vector<2x128xf32>
    %30 = tpu.matmul %28, %29, %cst_33 {dimension_numbers = #tpu.dot_dimension_numbers<[1], [0], [0], [1], [0, 0, 1, 1], [], []>} : vector<2x256xf32>, vector<256x128xf32>, vector<2x128xf32> -> vector<2x128xf32>
    %c1_34 = arith.constant 1 : index
    %c0_35 = arith.constant 0 : index
    %31 = vector.load %arg18[%c1_34, %c0_35] : memref<5x256xf32, #tpu.memory_space<vmem>>, vector<2x256xf32>
    %c0_36 = arith.constant 0 : index
    %c0_37 = arith.constant 0 : index
    %32 = vector.load %arg9[%c0_36, %c0_37] : memref<256x128xf32, #tpu.memory_space<vmem>>, vector<256x128xf32>
    %cst_38 = arith.constant dense<0.000000e+00> : vector<2x128xf32>
    %33 = tpu.matmul %31, %32, %cst_38 {dimension_numbers = #tpu.dot_dimension_numbers<[1], [0], [0], [1], [0, 0, 1, 1], [], []>} : vector<2x256xf32>, vector<256x128xf32>, vector<2x128xf32> -> vector<2x128xf32>
    %34 = arith.addf %30, %33 : vector<2x128xf32>
    %c0_39 = arith.constant 0 : index
    %c0_40 = arith.constant 0 : index
    %35 = vector.load %arg10[%c0_39, %c0_40] : memref<1x128xf32, #tpu.memory_space<vmem>>, vector<1x128xf32>
    %36 = vector.broadcast %35 : vector<1x128xf32> to vector<2x128xf32>
    %37 = arith.addf %34, %36 : vector<2x128xf32>
    %cst_41 = arith.constant 0.000000e+00 : f32
    %38 = vector.broadcast %cst_41 : f32 to vector<2x128xf32>
    %39 = arith.maximumf %37, %38 : vector<2x128xf32>
    %c0_42 = arith.constant 0 : index
    %c0_43 = arith.constant 0 : index
    %c0_44 = arith.constant 0 : index
    %40 = vector.load %arg15[%c0_42, %c0_43, %c0_44] : memref<1x5x128xf32, #tpu.memory_space<vmem>>, vector<1x2x128xf32>
    %41 = vector.shape_cast %40 : vector<1x2x128xf32> to vector<2x128xf32>
    %42 = vector.shape_cast %39 : vector<2x128xf32> to vector<1x2x128xf32>
    tpu.vector_store %arg15[%c0_42, %c0_43, %c0_44], %42 {strides = array<i32>} : memref<1x5x128xf32, #tpu.memory_space<vmem>>, vector<1x2x128xf32>,
    %c0_45 = arith.constant 0 : index
    %c0_46 = arith.constant 0 : index
    %43 = vector.load %arg11[%c0_45, %c0_46] : memref<2x128xf32, #tpu.memory_space<vmem>>, vector<2x128xf32>
    %44 = arith.mulf %39, %43 : vector<2x128xf32>
    %c0_47 = arith.constant 0 : index
    %c0_48 = arith.constant 0 : index
    %45 = vector.load %arg12[%c0_47, %c0_48] : memref<1x2xf32, #tpu.memory_space<vmem>>, vector<1x2xf32>
    %cst_49 = arith.constant dense<0.000000e+00> : vector<1x128xf32>
    %46 = tpu.matmul %45, %44, %cst_49 {dimension_numbers = #tpu.dot_dimension_numbers<[1], [0], [0], [1], [0, 0, 1, 1], [], []>} : vector<1x2xf32>, vector<2x128xf32>, vector<1x128xf32> -> vector<1x128xf32>
    %c0_50 = arith.constant 0 : index
    %c0_51 = arith.constant 0 : index
    %47 = vector.load %arg13[%c0_50, %c0_51] : memref<128x32xf32, #tpu.memory_space<vmem>>, vector<128x32xf32>
    %cst_52 = arith.constant dense<0.000000e+00> : vector<1x32xf32>
    %48 = tpu.matmul %46, %47, %cst_52 {dimension_numbers = #tpu.dot_dimension_numbers<[1], [0], [0], [1], [0, 0, 1, 1], [], []>} : vector<1x128xf32>, vector<128x32xf32>, vector<1x32xf32> -> vector<1x32xf32>
    %c0_53 = arith.constant 0 : index
    %c0_54 = arith.constant 0 : index
    %49 = vector.load %arg14[%c0_53, %c0_54] : memref<1x32xf32, #tpu.memory_space<vmem>>, vector<1x32xf32>
    %50 = arith.addf %48, %49 : vector<1x32xf32>
    %51 = tpu.iota {dimensions = array<i32: 1>} : vector<1x32xi32>
    %c16_i32 = arith.constant 16 : i32
    %52 = vector.broadcast %c16_i32 : i32 to vector<1x32xi32>
    %53 = arith.cmpi slt, %51, %52 : vector<1x32xi32>
    %cst_55 = arith.constant 0.000000e+00 : f32
    %54 = vector.broadcast %cst_55 : f32 to vector<1x32xf32>
    %55 = arith.maximumf %50, %54 : vector<1x32xf32>
    %56 = math.absf %50 : vector<1x32xf32>
    %cst_56 = arith.constant 0.000000e+00 : f32
    %57 = vector.broadcast %cst_56 : f32 to vector<1x32xf32>
    %58 = arith.subf %57, %56 : vector<1x32xf32>
    %59 = math.exp %58 : vector<1x32xf32>
    %60 = math.log1p %59 : vector<1x32xf32>
    %61 = arith.addf %55, %60 : vector<1x32xf32>
    %cst_57 = arith.constant 9.99999997E-7 : f32
    %62 = vector.broadcast %cst_57 : f32 to vector<1x32xf32>
    %63 = arith.addf %62, %61 : vector<1x32xf32>
    %64 = arith.select %53, %50, %63 : vector<1x32xi1>, vector<1x32xf32>
    %c0_58 = arith.constant 0 : index
    %c0_59 = arith.constant 0 : index
    %c0_60 = arith.constant 0 : index
    %65 = vector.load %arg16[%c0_58, %c0_59, %c0_60] : memref<1x1x32xf32, #tpu.memory_space<vmem>>, vector<1x1x32xf32>
    %66 = vector.shape_cast %65 : vector<1x1x32xf32> to vector<1x32xf32>
    %67 = vector.shape_cast %64 : vector<1x32xf32> to vector<1x1x32xf32>
    tpu.vector_store %arg16[%c0_58, %c0_59, %c0_60], %67 {strides = array<i32>} : memref<1x1x32xf32, #tpu.memory_space<vmem>>, vector<1x1x32xf32>,
    return
  }
  func.func @transform_0(%arg0: i32) -> (i32, i32, i32) {
    %c0_i32 = arith.constant 0 : i32
    %c0_i32_0 = arith.constant 0 : i32
    %c0_i32_1 = arith.constant 0 : i32
    return %arg0, %c0_i32, %c0_i32_0 : i32, i32, i32
  }
  func.func @transform_1(%arg0: i32) -> (i32, i32) {
    %c0_i32 = arith.constant 0 : i32
    %c0_i32_0 = arith.constant 0 : i32
    %c0_i32_1 = arith.constant 0 : i32
    return %c0_i32, %c0_i32_0 : i32, i32
  }
  func.func @transform_2(%arg0: i32) -> (i32, i32) {
    %c0_i32 = arith.constant 0 : i32
    %c0_i32_0 = arith.constant 0 : i32
    %c0_i32_1 = arith.constant 0 : i32
    return %c0_i32, %c0_i32_0 : i32, i32
  }
  func.func @transform_3(%arg0: i32) -> (i32, i32) {
    %c0_i32 = arith.constant 0 : i32
    %c0_i32_0 = arith.constant 0 : i32
    %c0_i32_1 = arith.constant 0 : i32
    return %c0_i32, %c0_i32_0 : i32, i32
  }
  func.func @transform_4(%arg0: i32) -> (i32, i32) {
    %c0_i32 = arith.constant 0 : i32
    %c0_i32_0 = arith.constant 0 : i32
    %c0_i32_1 = arith.constant 0 : i32
    return %c0_i32, %c0_i32_0 : i32, i32
  }
  func.func @transform_5(%arg0: i32) -> (i32, i32) {
    %c0_i32 = arith.constant 0 : i32
    %c0_i32_0 = arith.constant 0 : i32
    %c0_i32_1 = arith.constant 0 : i32
    return %c0_i32, %c0_i32_0 : i32, i32
  }
  func.func @transform_6(%arg0: i32) -> (i32, i32) {
    %c0_i32 = arith.constant 0 : i32
    %c0_i32_0 = arith.constant 0 : i32
    %c0_i32_1 = arith.constant 0 : i32
    return %c0_i32, %c0_i32_0 : i32, i32
  }
  func.func @transform_7(%arg0: i32) -> (i32, i32) {
    %c0_i32 = arith.constant 0 : i32
    %c0_i32_0 = arith.constant 0 : i32
    %c0_i32_1 = arith.constant 0 : i32
    return %c0_i32, %c0_i32_0 : i32, i32
  }
  func.func @transform_8(%arg0: i32) -> (i32, i32) {
    %c0_i32 = arith.constant 0 : i32
    %c0_i32_0 = arith.constant 0 : i32
    %c0_i32_1 = arith.constant 0 : i32
    return %c0_i32, %c0_i32_0 : i32, i32
  }
  func.func @transform_9(%arg0: i32) -> (i32, i32) {
    %c0_i32 = arith.constant 0 : i32
    %c0_i32_0 = arith.constant 0 : i32
    %c0_i32_1 = arith.constant 0 : i32
    return %c0_i32, %c0_i32_0 : i32, i32
  }
  func.func @transform_10(%arg0: i32) -> (i32, i32) {
    %c0_i32 = arith.constant 0 : i32
    %c0_i32_0 = arith.constant 0 : i32
    %c0_i32_1 = arith.constant 0 : i32
    return %c0_i32, %c0_i32_0 : i32, i32
  }
  func.func @transform_11(%arg0: i32) -> (i32, i32) {
    %c0_i32 = arith.constant 0 : i32
    %c0_i32_0 = arith.constant 0 : i32
    %c0_i32_1 = arith.constant 0 : i32
    return %c0_i32, %c0_i32_0 : i32, i32
  }
  func.func @transform_12(%arg0: i32) -> (i32, i32) {
    %c0_i32 = arith.constant 0 : i32
    %c0_i32_0 = arith.constant 0 : i32
    %c0_i32_1 = arith.constant 0 : i32
    return %c0_i32, %c0_i32_0 : i32, i32
  }
  func.func @transform_13(%arg0: i32) -> (i32, i32) {
    %c0_i32 = arith.constant 0 : i32
    %c0_i32_0 = arith.constant 0 : i32
    %c0_i32_1 = arith.constant 0 : i32
    return %c0_i32, %c0_i32_0 : i32, i32
  }
  func.func @transform_14(%arg0: i32) -> (i32, i32, i32) {
    %c0_i32 = arith.constant 0 : i32
    %c0_i32_0 = arith.constant 0 : i32
    %c0_i32_1 = arith.constant 0 : i32
    return %arg0, %c0_i32, %c0_i32_0 : i32, i32, i32
  }
  func.func @transform_15(%arg0: i32) -> (i32, i32, i32) {
    %c0_i32 = arith.constant 0 : i32
    %c0_i32_0 = arith.constant 0 : i32
    %c0_i32_1 = arith.constant 0 : i32
    return %arg0, %c0_i32, %c0_i32_0 : i32, i32, i32
  }
}

</mosaic_0001>

<bundles_post_ra>
// kernel: tpu_custom_call.1
= control target key start
LH: loop header
LB: loop body
LE: loop exit
PB: predicated region body
PF: predicated region fallthrough
CT: control target
= control target key end

     0   :  { %s2932_s0 = inlined_call_operand.vmem [shape: f32[2,5,512], index: 0, kind: input, shape index: {}]   ;;  %s2933_s1 = inlined_call_operand.hbm [shape: f32[512,256], index: 1, kind: input, shape index: {}]   ;;  %s2934_s2 = inlined_call_operand.hbm [shape: f32[512,256], index: 2, kind: input, shape index: {}]   ;;  %s2935_s3 = inlined_call_operand.vmem [shape: f32[1,256], index: 3, kind: input, shape index: {}]   ;;  %s2936_s4 = inlined_call_operand.hbm [shape: f32[256,256], index: 4, kind: input, shape index: {}]   ;;  %s2937_s5 = inlined_call_operand.hbm [shape: f32[256,256], index: 5, kind: input, shape index: {}]   ;;  %s2938_s6 = inlined_call_operand.vmem [shape: f32[1,256], index: 6, kind: input, shape index: {}]   ;;  %s2939_s7 = inlined_call_operand.vmem [shape: f32[256,128], index: 7, kind: input, shape index: {}]   ;;  %s2940_s8 = inlined_call_operand.hbm [shape: f32[256,128], index: 8, kind: input, shape index: {}]   ;;  %s2941_s9 = inlined_call_operand.vmem [shape: f32[1,128], index: 9, kind: input, shape index: {}]   ;;  %s2942_s10 = inlined_call_operand.vmem [shape: f32[2,128], index: 10, kind: input, shape index: {}]   ;;  %s2943_s11 = inlined_call_operand.vmem [shape: f32[1,2], index: 11, kind: input, shape index: {}]   ;;  %s2944_s12 = inlined_call_operand.vmem [shape: f32[128,32], index: 12, kind: input, shape index: {}]   ;;  %s2945_s13 = inlined_call_operand.vmem [shape: f32[1,32], index: 13, kind: input, shape index: {}]   ;;  %s2946_s14 = inlined_call_operand.vmem [shape: f32[2,5,128], index: 14, kind: output, shape index: {0}]   ;;  %s2947_s15 = inlined_call_operand.hbm [shape: f32[2,1,32], index: 15, kind: output, shape index: {1}]  }
   0x1   :  { %2956 = sst [smem:[#allocation24_spill]] %s2934_s2 }
   0x2   :  { %2957 = sst [smem:[#allocation25_spill]] %s2947_s15 }
   0x3   :  { %21 = vsyncpa [#allocation5], 0 }
   0x4   :  { %22 = vsyncpa [#allocation8], 0 }
   0x5   :  { %23 = vsyncpa [#allocation11], 0 }
   0x6   :  { %24 = vsyncpa [#allocation6], 0 }
   0x7   :  { %26 = vsyncpa [#allocation6 + $0x1], 0  ;;  %s2564_s18 = smov 0   ;;  %s2566_s19 = smov 0  }
   0x8   :  { %s2568_s20 = smov 0   ;;  %s2570_s21 = smov 0  }
   0x9 LB: > { %2958 = sst [smem:[#allocation18_spill]] %s2458_s18  ;;  %s2585_s22 = sadd.s32 4294967295, %s2470_s21   ;;  %s2470_s21 = sphi %s2570_s21, %s2980_s21   ;;  %s2466_s20 = sphi %s2568_s20, %s2982_s20   ;;  %s2462_s19 = sphi %s2566_s19, %s2984_s19   ;;  %s2458_s18 = sphi %s2564_s18, %s2983_s18  }
   0xa   : > { %2959 = sst [smem:[#allocation19_spill]] %s2466_s20  ;;  %s2015_s23 = sadd.s32 4294967294, %s2470_s21  }
   0xb   : > { %2960 = sst [smem:[#allocation20_spill]] %s2470_s21  ;;  %s2589_s24 = sadd.s32 1, %s2470_s21  }
   0xc   : > { %2961 = sst [smem:[#allocation21_spill]] %s2589_s24  ;;  %s364_s25 = sadd.s32 1, %s2466_s20 }
   0xd   : > { %s361_s26 = ssub.s32 %s2470_s21, %s2589_s24  ;;  %p374_p0 = scmp.ne.s32.totalorder %s2466_s20, %s2462_s19 }
   0xe   : > { %p362_p1 = scmp.eq.s32.totalorder %s361_s26, 0  ;;  %p375_p2 = scmp.eq.s32.totalorder %s2585_s22, 1 }
   0xf   : > { %p380_p3 = scmp.ne.s32.totalorder %s2462_s19, %s2458_s18  ;;  %p381_p4 = scmp.eq.s32.totalorder %s2015_s23, 1 }
  0x10   : > { %s2600_s27 = scalar_select %p362_p1, %s2466_s20, %s364_s25  }
  0x11   : > { %p2602_p5 = por %p375_p2, %p374_p0  ;;  %p2606_p6 = por %p381_p4, %p380_p3 }
  0x12   : > { %2962 = sst [smem:[#allocation22_spill]] %s2600_s27  ;;  %p2016_p7 = scmp.ge.s32.totalorder %s2470_s21, 1 }
  0x13   : > { %s2964_s29 = scalar_select %p2606_p6, 1, 0 }
  0x14   : > { %p388_p8 = scmp.lt.s32.totalorder %s2470_s21, 3  ;;  %p2955_p9 = scmp.eq.s32.totalorder %s2585_s22, 0 }
  0x15   : > { %2965 = sst [smem:[#allocation23_spill]] %s2964_s29  ;;  %s2472_s16 = smov [#allocation7]  }
  0x16   : > { %p2613_p10 = pnand %p2016_p7, %p388_p8  ;;  %s413_s17 = sshll.u32 %s2472_s16, 4  ;;  %s414_s17 = int_to_ptr.vmem [resolvable:$true] %s413_s17 }
  0x17   : > { %s2473_s25 = smov [#allocation10]   ;;  %s2474_s27 = smov [#allocation4]  }
  0x18   : > { %p2190_p11 = pneg %p2613_p10  ;;  %s442_s26 = sshll.u32 %s2473_s25, 4  ;;  %s443_s26 = int_to_ptr.vmem [resolvable:$true] %s442_s26 }
  0x19   : > { %s400_s20 = sshll.u32 %s2474_s27, 4  ;;  %s2279_s29 = scalar_lea.vmem %s414_s17, 16384  ;;  %s401_s20 = int_to_ptr.vmem [resolvable:$true] %s400_s20 }
  0x1a   : > { %p2621_p12 = pnand %p2955_p9, %p2190_p11  ;;  %p2280_p0 = scmp.ne.s32.totalorder %s414_s17, %s2279_s29 }
  0x1b   : > { %p2287_p3 = scmp.lt.s32.totalorder %s414_s17, %s414_s17  ;;  %p2288_p4 = scmp.lt.s32.totalorder %s2279_s29, %s2279_s29 }
  0x1c   : > { %p2627_p13 = pneg %p2621_p12 }
  0x1d   : > { %p2289_p7 = por %p2288_p4, %p2287_p3 }
  0x1e   : > { %p2282_p1 = pnand %p2280_p0, %p2627_p13 }
  0x20   : > { %p2283_p2 = pneg %p2282_p1 }
  0x22   : > { %p2290_p8 = pnand %p2289_p7, %p2283_p2 }
  0x24   : > { %2293 = shalt.err (!%p2290_p8)
}
  0x25   : > { %s2475_s16 = smov 256   ;;  %s2476_s27 = smov 16  }
  0x26   : > { %s2969_s2 = sld [smem:[#allocation24_spill]]  ;;  %s2305_s21 = scalar_lea.vmem %s443_s26, 8192 }
  0x27   : > { %p2306_p11 = scmp.ne.s32.totalorder %s443_s26, %s2305_s21  ;;  %p2313_p3 = scmp.lt.s32.totalorder %s443_s26, %s443_s26 }
  0x28   : > { %p2314_p2 = scmp.lt.s32.totalorder %s2305_s21, %s2305_s21 }
  0x29   : > { %p2308_p0 = pnand %p2306_p11, %p2627_p13 }
  0x2a   : > { %p2315_p4 = por %p2314_p2, %p2313_p3 }
  0x2b   : > { %p2309_p1 = pneg %p2308_p0 }
  0x2c   : > { %2196 = dma.hbm_to_vmem [thread:$0]  (!%p2621_p12), %s2969_s2, 16384, %s414_s17, [#allocation8], %s2475_s16, %s2475_s16, %s2476_s27  }
  0x2d   : > { %p2316_p7 = pnand %p2315_p4, %p2309_p1 }
  0x2f   : > { %2319 = shalt.err (!%p2316_p7)
}
  0x30   : > { %2202 = dma.hbm_to_vmem [thread:$0]  (!%p2621_p12), %s2937_s5, 8192, %s443_s26, [#allocation11], %s2475_s16, %s2475_s16, %s2476_s27  }
  0x31   : > { %s2331_s18 = scalar_lea.vmem %s401_s20, 16384  ;;  %p2339_p9 = scmp.lt.s32.totalorder %s401_s20, %s401_s20 }
  0x32   : > { %p2332_p8 = scmp.ne.s32.totalorder %s401_s20, %s2331_s18  ;;  %p2340_p3 = scmp.lt.s32.totalorder %s2331_s18, %s2331_s18 }
  0x34   : > { %p2334_p11 = pnand %p2332_p8, %p2627_p13  ;;  %p2341_p1 = por %p2340_p3, %p2339_p9 }
  0x36   : > { %p2335_p0 = pneg %p2334_p11 }
  0x38   : > { %p2342_p2 = pnand %p2341_p1, %p2335_p0 }
  0x3a   : > { %2345 = shalt.err (!%p2342_p2)
}
  0x3b   : > { %2193 = dma.hbm_to_vmem [thread:$0]  (!%p2621_p12), %s2933_s1, 16384, %s401_s20, [#allocation5], %s2475_s16, %s2475_s16, %s2476_s27  }
  0x3c   : > { %s2477_s17 = smov [#allocation9]   ;;  %s2478_s25 = smov [#allocation12]  }
  0x3d   : > { %s429_s26 = sshll.u32 %s2477_s17, 4  ;;  %s461_s29 = sshll.u32 %s2478_s25, 4  ;;  %s430_s26 = int_to_ptr.vmem [resolvable:$true] %s429_s26  ;;  %s462_s29 = int_to_ptr.vmem [resolvable:$true] %s461_s29 }
  0x3e   : > { %s2357_s2 = scalar_lea.vmem %s430_s26, 8192  ;;  %p2365_p8 = scmp.lt.s32.totalorder %s430_s26, %s430_s26 }
  0x3f   : > { %p2358_p4 = scmp.ne.s32.totalorder %s430_s26, %s2357_s2  ;;  %p2366_p11 = scmp.lt.s32.totalorder %s2357_s2, %s2357_s2 }
  0x41   : > { %p2360_p9 = pnand %p2358_p4, %p2627_p13  ;;  %p2367_p0 = por %p2366_p11, %p2365_p8 }
  0x43   : > { %p2361_p7 = pneg %p2360_p9 }
  0x45   : > { %p2368_p3 = pnand %p2367_p0, %p2361_p7 }
  0x47   : > { %2371 = shalt.err (!%p2368_p3)
}
  0x48   : > { %2199 = dma.hbm_to_vmem [thread:$0]  (!%p2621_p12), %s2936_s4, 8192, %s430_s26, [#allocation8], %s2475_s16, %s2475_s16, %s2476_s27  }
  0x49   : > { %s2383_s21 = scalar_lea.vmem %s462_s29, 4096  ;;  %p2391_p9 = scmp.lt.s32.totalorder %s462_s29, %s462_s29 }
  0x4a   : > { %p2384_p1 = scmp.ne.s32.totalorder %s462_s29, %s2383_s21  ;;  %p2392_p8 = scmp.lt.s32.totalorder %s2383_s21, %s2383_s21 }
  0x4c   : > { %p2386_p2 = pnand %p2384_p1, %p2627_p13  ;;  %p2393_p7 = por %p2392_p8, %p2391_p9 }
  0x4e   : > { %p2387_p4 = pneg %p2386_p2 }
  0x50   : > { %p2394_p11 = pnand %p2393_p7, %p2387_p4 }
  0x52   : > { %2397 = shalt.err (!%p2394_p11)
}
  0x53   : > { %s2479_s2 = smov 128   ;;  %s2480_s15 = smov 8  }
  0x54   : > { %2205 = dma.hbm_to_vmem [thread:$0]  (!%p2621_p12), %s2940_s8, 4096, %s462_s29, [#allocation11], %s2479_s2, %s2479_s2, %s2480_s15  }
  0x55   : > { %500 = sbr.rel (%p2613_p10) target bundleno = 1308 (0x51c), region = 76  ;;  %p2970_p0 = scmp.eq.s32.totalorder (!%p2613_p10), %s2585_s22, 0 }
  0x5a   : > { %2441 = dma.done.wait (%p2970_p0), [#allocation5], 16384   ;;  %p2971_p13 = pmov %p2970_p0 }
  0x5b   : > { %p2972_p3 = pmov %p2970_p0 }
  0x5c   : > { %2443 = vsyncadd (%p2971_p13), [#allocation5], 4294950912 }
  0x5d   : > { %2445 = dma.done.wait (%p2972_p3), [#allocation8], 24576   ;;  %p2973_p1 = pmov %p2970_p0 }
  0x5e   : > { %p2974_p2 = pmov %p2970_p0 }
  0x5f   : > { %2447 = vsyncadd (%p2973_p1), [#allocation8], 4294942720 }
  0x60   : > { %2449 = dma.done.wait (%p2974_p2), [#allocation11], 12288   ;;  %p2975_p12 = pmov %p2970_p0 }
  0x61   : > { %v743_v0 = vld [vmem:[#allocation7 + $0xf8] sm:$0xff]  ;;  %v742_v2 = vld [vmem:[#allocation7 + $0xf0] sm:$0xff]  ;;  %v741_v4 = vld [vmem:[#allocation7 + $0xe8] sm:$0xff]  ;;  %p567_p10 = scmp.lt.s32.totalorder %s2585_s22, 1  ;;  %vm2482_vm0 = vmmov 0   ;;  %vm1683_vm1 = vcmask 1041408  }
  0x62   : > { %2451 = vsyncadd (%p2975_p12), [#allocation11], 4294955008  ;;  %v807_v1 = vld [vmem:[#allocation7 + $0x2f8] sm:$0xff]  ;;  %852 = vmatprep.subr.mxu0 %v743_v0  ;;  %v806_v3 = vld [vmem:[#allocation7 + $0x2f0] sm:$0xff]  ;;  %vm1679_vm2 = vcmask 15360   ;;  %s565_s17 = sand.u32 1, %s2462_s19  }
  0x63   : > { %923 = vmatprep.subr.mxu1 %v807_v1  ;;  %v805_v5 = vld [vmem:[#allocation7 + $0x2e8] sm:$0xff]  ;;  %853 = vmatpush1.msra.mxu0 %v742_v2  ;;  %v740_v6 = vld [vmem:[#allocation7 + $0xe0] sm:$0xff]  ;;  %v739_v8 = vld [vmem:[#allocation7 + $0xd8] sm:$0xff]  ;;  %s2696_s24 = scalar_select %p567_p10, %s2585_s22, 1  ;;  %vm1864_vm5 = vcmask 253952  }
  0x64   : > { %924 = vmatpush1.msra.mxu1 %v806_v3  ;;  %v804_v7 = vld [vmem:[#allocation7 + $0x2e0] sm:$0xff]  ;;  %854 = vmatprep.subr.mxu0 %v741_v4  ;;  %v803_v9 = vld [vmem:[#allocation7 + $0x2d8] sm:$0xff]  ;;  %v738_v10 = vld [vmem:[#allocation7 + $0xd0] sm:$0xff]  ;;  %s2035_s25 = sshll.u32 %s2585_s22, 4  ;;  %s2976_s26 = sld [smem:[#allocation25_spill]] }
  0x65   : > { %925 = vmatprep.subr.mxu1 %v805_v5  ;;  %v802_v11 = vld [vmem:[#allocation7 + $0x2d0] sm:$0xff]  ;;  %855 = vmatpush1.msra.mxu0 %v740_v6  ;;  %v737_v12 = vld [vmem:[#allocation7 + $0xc8] sm:$0xff]  ;;  %v736_v14 = vld [vmem:[#allocation7 + $0xc0] sm:$0xff]  ;;  %s2038_s30 = sshll.u32 %s2696_s24, 5  ;;  %s1871_s20 = scalar_lea.sflag [#allocation6], %s565_s17 }
  0x66   : > { %926 = vmatpush1.msra.mxu1 %v804_v7  ;;  %v801_v13 = vld [vmem:[#allocation7 + $0x2c8] sm:$0xff]  ;;  %856 = vmatprep.subr.mxu0 %v739_v8  ;;  %v800_v15 = vld [vmem:[#allocation7 + $0x2c0] sm:$0xff]  ;;  %v735_v16 = vld [vmem:[#allocation7 + $0xb8] sm:$0xff]  ;;  %s2702_s27 = scalar_lea.vmem %s2932_s0, %s2038_s30  ;;  %s2031_s30 = sshll.u32 %s2696_s24, 3 }
  0x67   : > { %927 = vmatprep.subr.mxu1 %v803_v9  ;;  %857 = vmatpush1.msra.mxu0 %v738_v10  ;;  %v799_v17 = vld [vmem:[#allocation7 + $0x2b8] sm:$0xff]  ;;  %v734_v18 = vld [vmem:[#allocation7 + $0xb0] sm:$0xff]  ;;  %v733_v20 = vld [vmem:[#allocation7 + $0xa8] sm:$0xff]  ;;  %s2483_s22 = smov [#allocation13]  }
  0x68   : > { %928 = vmatpush1.msra.mxu1 %v802_v11  ;;  %858 = vmatprep.subr.mxu0 %v737_v12  ;;  %v798_v19 = vld [vmem:[#allocation7 + $0x2b0] sm:$0xff]  ;;  %v797_v21 = vld [vmem:[#allocation7 + $0x2a8] sm:$0xff]  ;;  %v732_v22 = vld [vmem:[#allocation7 + $0xa0] sm:$0xff]  ;;  %s2402_s24 = sshll.u32 %s2483_s22, 4  ;;  %s2403_s24 = int_to_ptr.vmem [resolvable:$false] %s2402_s24 }
  0x69   : > { %929 = vmatprep.subr.mxu1 %v801_v13  ;;  %859 = vmatpush1.msra.mxu0 %v736_v14  ;;  %v796_v23 = vld [vmem:[#allocation7 + $0x2a0] sm:$0xff]  ;;  %v731_v24 = vld [vmem:[#allocation7 + $0x98] sm:$0xff]  ;;  %v730_v26 = vld [vmem:[#allocation7 + $0x90] sm:$0xff]  ;;  %s2404_s21 = scalar_lea.vmem %s2403_s24, 32 }
  0x6a   : > { %930 = vmatpush1.msra.mxu1 %v800_v15  ;;  %860 = vmatprep.subr.mxu0 %v735_v16  ;;  %v795_v25 = vld [vmem:[#allocation7 + $0x298] sm:$0xff]  ;;  %v794_v27 = vld [vmem:[#allocation7 + $0x290] sm:$0xff]  ;;  %v729_v28 = vld [vmem:[#allocation7 + $0x88] sm:$0xff]  ;;  %s2897_s29 = scalar_lea.hbm %s2976_s26, %s2035_s25 }
  0x6b   : > { %931 = vmatprep.subr.mxu1 %v799_v17  ;;  %861 = vmatpush1.msra.mxu0 %v734_v18  ;;  %v793_v29 = vld [vmem:[#allocation7 + $0x288] sm:$0xff]  ;;  %v728_v30 = vld [vmem:[#allocation7 + $0x80] sm:$0xff]  ;;  %v727_v32 = vld [vmem:[#allocation7 + $0x78] sm:$0xff] }
  0x6c   : > { %932 = vmatpush1.msra.mxu1 %v798_v19  ;;  %862 = vmatprep.subr.mxu0 %v733_v20  ;;  %v792_v31 = vld [vmem:[#allocation7 + $0x280] sm:$0xff]  ;;  %v791_v33 = vld [vmem:[#allocation7 + $0x278] sm:$0xff]  ;;  %v726_v34 = vld [vmem:[#allocation7 + $0x70] sm:$0xff] }
  0x6d   : > { %933 = vmatprep.subr.mxu1 %v797_v21  ;;  %863 = vmatpush1.msra.mxu0 %v732_v22  ;;  %v790_v35 = vld [vmem:[#allocation7 + $0x270] sm:$0xff]  ;;  %v725_v36 = vld [vmem:[#allocation7 + $0x68] sm:$0xff]  ;;  %v724_v38 = vld [vmem:[#allocation7 + $0x60] sm:$0xff] }
  0x6e   : > { %934 = vmatpush1.msra.mxu1 %v796_v23  ;;  %864 = vmatprep.subr.mxu0 %v731_v24  ;;  %v789_v37 = vld [vmem:[#allocation7 + $0x268] sm:$0xff]  ;;  %v788_v39 = vld [vmem:[#allocation7 + $0x260] sm:$0xff]  ;;  %v723_v40 = vld [vmem:[#allocation7 + $0x58] sm:$0xff] }
  0x6f   : > { %935 = vmatprep.subr.mxu1 %v795_v25  ;;  %865 = vmatpush1.msra.mxu0 %v730_v26  ;;  %v787_v41 = vld [vmem:[#allocation7 + $0x258] sm:$0xff]  ;;  %v722_v42 = vld [vmem:[#allocation7 + $0x50] sm:$0xff]  ;;  %v721_v44 = vld [vmem:[#allocation7 + $0x48] sm:$0xff] }
  0x70   : > { %936 = vmatpush1.msra.mxu1 %v794_v27  ;;  %866 = vmatprep.subr.mxu0 %v729_v28  ;;  %v786_v43 = vld [vmem:[#allocation7 + $0x250] sm:$0xff]  ;;  %v785_v45 = vld [vmem:[#allocation7 + $0x248] sm:$0xff]  ;;  %v720_v46 = vld [vmem:[#allocation7 + $0x40] sm:$0xff] }
  0x71   : > { %937 = vmatprep.subr.mxu1 %v793_v29  ;;  %867 = vmatpush1.msra.mxu0 %v728_v30  ;;  %v784_v47 = vld [vmem:[#allocation7 + $0x240] sm:$0xff]  ;;  %v719_v48 = vld [vmem:[#allocation7 + $0x38] sm:$0xff]  ;;  %v718_v50 = vld [vmem:[#allocation7 + $0x30] sm:$0xff] }
  0x72   : > { %938 = vmatpush1.msra.mxu1 %v792_v31  ;;  %868 = vmatprep.subr.mxu0 %v727_v32  ;;  %v783_v49 = vld [vmem:[#allocation7 + $0x238] sm:$0xff]  ;;  %v782_v51 = vld [vmem:[#allocation7 + $0x230] sm:$0xff]  ;;  %v717_v52 = vld [vmem:[#allocation7 + $0x28] sm:$0xff] }
  0x73   : > { %939 = vmatprep.subr.mxu1 %v791_v33  ;;  %869 = vmatpush1.msra.mxu0 %v726_v34  ;;  %v781_v53 = vld [vmem:[#allocation7 + $0x228] sm:$0xff]  ;;  %v716_v54 = vld [vmem:[#allocation7 + $0x20] sm:$0xff]  ;;  %v715_v56 = vld [vmem:[#allocation7 + $0x18] sm:$0xff] }
  0x74   : > { %940 = vmatpush1.msra.mxu1 %v790_v35  ;;  %870 = vmatprep.subr.mxu0 %v725_v36  ;;  %v780_v55 = vld [vmem:[#allocation7 + $0x220] sm:$0xff]  ;;  %v779_v57 = vld [vmem:[#allocation7 + $0x218] sm:$0xff]  ;;  %v714_v58 = vld [vmem:[#allocation7 + $0x10] sm:$0xff] }
  0x75   : > { %941 = vmatprep.subr.mxu1 %v789_v37  ;;  %871 = vmatpush1.msra.mxu0 %v724_v38  ;;  %v778_v59 = vld [vmem:[#allocation7 + $0x210] sm:$0xff]  ;;  %v713_v60 = vld [vmem:[#allocation7 + $0x8] sm:$0xff]  ;;  %v712_v62 = vld [vmem:[#allocation7] sm:$0xff] }
  0x76   : > { %942 = vmatpush1.msra.mxu1 %v788_v39  ;;  %872 = vmatprep.subr.mxu0 %v723_v40  ;;  %v777_v61 = vld [vmem:[#allocation7 + $0x208] sm:$0xff]  ;;  %v776_v63 = vld [vmem:[#allocation7 + $0x200] sm:$0xff]  ;;  %v775_v0 = vld [vmem:[#allocation7 + $0x1f8] sm:$0xff] }
  0x77   : > { %943 = vmatprep.subr.mxu1 %v787_v41  ;;  %873 = vmatpush1.msra.mxu0 %v722_v42  ;;  %v839_v1 = vld [vmem:[#allocation7 + $0x3f8] sm:$0xff]  ;;  %v774_v2 = vld [vmem:[#allocation7 + $0x1f0] sm:$0xff]  ;;  %v773_v4 = vld [vmem:[#allocation7 + $0x1e8] sm:$0xff] }
  0x78   : > { %944 = vmatpush1.msra.mxu1 %v786_v43  ;;  %874 = vmatprep.subr.mxu0 %v721_v44  ;;  %v838_v3 = vld [vmem:[#allocation7 + $0x3f0] sm:$0xff]  ;;  %v837_v5 = vld [vmem:[#allocation7 + $0x3e8] sm:$0xff]  ;;  %v772_v6 = vld [vmem:[#allocation7 + $0x1e0] sm:$0xff] }
  0x79   : > { %945 = vmatprep.subr.mxu1 %v785_v45  ;;  %875 = vmatpush1.msra.mxu0 %v720_v46  ;;  %v836_v7 = vld [vmem:[#allocation7 + $0x3e0] sm:$0xff]  ;;  %v771_v8 = vld [vmem:[#allocation7 + $0x1d8] sm:$0xff]  ;;  %v770_v10 = vld [vmem:[#allocation7 + $0x1d0] sm:$0xff] }
  0x7a   : > { %946 = vmatpush1.msra.mxu1 %v784_v47  ;;  %876 = vmatprep.subr.mxu0 %v719_v48  ;;  %v835_v9 = vld [vmem:[#allocation7 + $0x3d8] sm:$0xff]  ;;  %v834_v11 = vld [vmem:[#allocation7 + $0x3d0] sm:$0xff]  ;;  %v769_v12 = vld [vmem:[#allocation7 + $0x1c8] sm:$0xff] }
  0x7b   : > { %947 = vmatprep.subr.mxu1 %v783_v49  ;;  %877 = vmatpush1.msra.mxu0 %v718_v50  ;;  %v833_v13 = vld [vmem:[#allocation7 + $0x3c8] sm:$0xff]  ;;  %v768_v14 = vld [vmem:[#allocation7 + $0x1c0] sm:$0xff]  ;;  %v767_v16 = vld [vmem:[#allocation7 + $0x1b8] sm:$0xff] }
  0x7c   : > { %948 = vmatpush1.msra.mxu1 %v782_v51  ;;  %878 = vmatprep.subr.mxu0 %v717_v52  ;;  %v832_v15 = vld [vmem:[#allocation7 + $0x3c0] sm:$0xff]  ;;  %v831_v17 = vld [vmem:[#allocation7 + $0x3b8] sm:$0xff]  ;;  %v766_v18 = vld [vmem:[#allocation7 + $0x1b0] sm:$0xff] }
  0x7d   : > { %949 = vmatprep.subr.mxu1 %v781_v53  ;;  %879 = vmatpush1.msra.mxu0 %v716_v54  ;;  %v830_v19 = vld [vmem:[#allocation7 + $0x3b0] sm:$0xff]  ;;  %v765_v20 = vld [vmem:[#allocation7 + $0x1a8] sm:$0xff]  ;;  %v764_v22 = vld [vmem:[#allocation7 + $0x1a0] sm:$0xff] }
  0x7e   : > { %950 = vmatpush1.msra.mxu1 %v780_v55  ;;  %880 = vmatprep.subr.mxu0 %v715_v56  ;;  %v829_v21 = vld [vmem:[#allocation7 + $0x3a8] sm:$0xff]  ;;  %v828_v23 = vld [vmem:[#allocation7 + $0x3a0] sm:$0xff]  ;;  %v763_v24 = vld [vmem:[#allocation7 + $0x198] sm:$0xff] }
  0x7f   : > { %951 = vmatprep.subr.mxu1 %v779_v57  ;;  %881 = vmatpush1.msra.mxu0 %v714_v58  ;;  %v827_v25 = vld [vmem:[#allocation7 + $0x398] sm:$0xff]  ;;  %v762_v26 = vld [vmem:[#allocation7 + $0x190] sm:$0xff]  ;;  %v761_v28 = vld [vmem:[#allocation7 + $0x188] sm:$0xff] }
  0x80   : > { %952 = vmatpush1.msra.mxu1 %v778_v59  ;;  %882 = vmatprep.subr.mxu0 %v713_v60  ;;  %v826_v27 = vld [vmem:[#allocation7 + $0x390] sm:$0xff]  ;;  %v825_v29 = vld [vmem:[#allocation7 + $0x388] sm:$0xff]  ;;  %v760_v30 = vld [vmem:[#allocation7 + $0x180] sm:$0xff] }
  0x81   : > { %953 = vmatprep.subr.mxu1 %v777_v61  ;;  %883 = vmatpush1.msra.mxu0 %v712_v62  ;;  %v824_v31 = vld [vmem:[#allocation7 + $0x380] sm:$0xff]  ;;  %v759_v32 = vld [vmem:[#allocation7 + $0x178] sm:$0xff]  ;;  %v758_v34 = vld [vmem:[#allocation7 + $0x170] sm:$0xff] }
  0x82   : > { %954 = vmatpush1.msra.mxu1 %v776_v63  ;;  %884 = vmatprep.subr.mxu0 %v775_v0  ;;  %v823_v33 = vld [vmem:[#allocation7 + $0x378] sm:$0xff]  ;;  %v822_v35 = vld [vmem:[#allocation7 + $0x370] sm:$0xff]  ;;  %v757_v36 = vld [vmem:[#allocation7 + $0x168] sm:$0xff] }
  0x83   : > { %955 = vmatprep.subr.mxu1 %v839_v1  ;;  %885 = vmatpush2.msra.mxu0 %v774_v2  ;;  %v821_v37 = vld [vmem:[#allocation7 + $0x368] sm:$0xff]  ;;  %v756_v38 = vld [vmem:[#allocation7 + $0x160] sm:$0xff]  ;;  %v755_v40 = vld [vmem:[#allocation7 + $0x158] sm:$0xff] }
  0x84   : > { %956 = vmatpush2.msra.mxu1 %v838_v3  ;;  %886 = vmatprep.subr.mxu0 %v773_v4  ;;  %v820_v39 = vld [vmem:[#allocation7 + $0x360] sm:$0xff]  ;;  %v819_v41 = vld [vmem:[#allocation7 + $0x358] sm:$0xff]  ;;  %v754_v42 = vld [vmem:[#allocation7 + $0x150] sm:$0xff] }
  0x85   : > { %957 = vmatprep.subr.mxu1 %v837_v5  ;;  %887 = vmatpush2.msra.mxu0 %v772_v6  ;;  %v818_v43 = vld [vmem:[#allocation7 + $0x350] sm:$0xff]  ;;  %v753_v44 = vld [vmem:[#allocation7 + $0x148] sm:$0xff]  ;;  %v752_v46 = vld [vmem:[#allocation7 + $0x140] sm:$0xff] }
  0x86   : > { %958 = vmatpush2.msra.mxu1 %v836_v7  ;;  %888 = vmatprep.subr.mxu0 %v771_v8  ;;  %v817_v45 = vld [vmem:[#allocation7 + $0x348] sm:$0xff]  ;;  %v816_v47 = vld [vmem:[#allocation7 + $0x340] sm:$0xff]  ;;  %v751_v48 = vld [vmem:[#allocation7 + $0x138] sm:$0xff] }
  0x87   : > { %959 = vmatprep.subr.mxu1 %v835_v9  ;;  %889 = vmatpush2.msra.mxu0 %v770_v10  ;;  %v815_v49 = vld [vmem:[#allocation7 + $0x338] sm:$0xff]  ;;  %v750_v50 = vld [vmem:[#allocation7 + $0x130] sm:$0xff]  ;;  %v749_v52 = vld [vmem:[#allocation7 + $0x128] sm:$0xff] }
  0x88   : > { %960 = vmatpush2.msra.mxu1 %v834_v11  ;;  %890 = vmatprep.subr.mxu0 %v769_v12  ;;  %v814_v51 = vld [vmem:[#allocation7 + $0x330] sm:$0xff]  ;;  %v813_v53 = vld [vmem:[#allocation7 + $0x328] sm:$0xff]  ;;  %v748_v54 = vld [vmem:[#allocation7 + $0x120] sm:$0xff] }
  0x89   : > { %961 = vmatprep.subr.mxu1 %v833_v13  ;;  %891 = vmatpush2.msra.mxu0 %v768_v14  ;;  %v812_v55 = vld [vmem:[#allocation7 + $0x320] sm:$0xff]  ;;  %v747_v56 = vld [vmem:[#allocation7 + $0x118] sm:$0xff]  ;;  %v709_v57 = vld [vmem:[%s2702_s27 + $0x8] sm:$0x1e] }
  0x8a   : > { %962 = vmatpush2.msra.mxu1 %v832_v15  ;;  %892 = vmatprep.subr.mxu0 %v767_v16  ;;  %v811_v58 = vld [vmem:[#allocation7 + $0x318] sm:$0xff]  ;;  %v746_v59 = vld [vmem:[#allocation7 + $0x110] sm:$0xff]  ;;  %v708_v62 = vld [vmem:[%s2702_s27] sm:$0x1e]  ;;  %v845_v2 = vrot.slane %v709_v57, 1 }
  0x8b   : > { %963 = vmatprep.subr.mxu1 %v831_v17  ;;  %893 = vmatpush2.msra.mxu0 %v766_v18  ;;  %v711_v60 = vld [vmem:[%s2702_s27 + $0x18] sm:$0x1e]  ;;  %v810_v61 = vld [vmem:[#allocation7 + $0x310] sm:$0xff]  ;;  %v745_v0 = vld [vmem:[#allocation7 + $0x108] sm:$0xff]  ;;  %v844_v6 = vrot.slane %v708_v62, 1 }
  0x8c   : > { %964 = vmatpush2.msra.mxu1 %v830_v19  ;;  %894 = vmatprep.subr.mxu0 %v765_v20  ;;  %v710_v63 = vld [vmem:[%s2702_s27 + $0x10] sm:$0x1e]  ;;  %v809_v1 = vld [vmem:[#allocation7 + $0x308] sm:$0xff]  ;;  %v744_v3 = vld [vmem:[#allocation7 + $0x100] sm:$0xff]  ;;  %v847_v4 = vrot.slane %v711_v60, 1 }
  0x8d   : > { %965 = vmatprep.subr.mxu1 %v829_v21  ;;  %895 = vmatpush2.msra.mxu0 %v764_v22  ;;  %v808_v5 = vld [vmem:[#allocation7 + $0x300] sm:$0xff]  ;;  %v846_v7 = vrot.slane %v710_v63, 1  ;;  %v611_v8 = vld [vmem:[#allocation4 + $0xf8] sm:$0xff]  ;;  %v610_v10 = vld [vmem:[#allocation4 + $0xf0] sm:$0xff] }
  0x8e   : > { %966 = vmatpush2.msra.mxu1 %v828_v23  ;;  %896 = vmatprep.subr.mxu0 %v763_v24  ;;  %v675_v9 = vld [vmem:[#allocation4 + $0x2f8] sm:$0xff]  ;;  %v674_v11 = vld [vmem:[#allocation4 + $0x2f0] sm:$0xff]  ;;  %v609_v12 = vld [vmem:[#allocation4 + $0xe8] sm:$0xff] }
  0x8f   : > { %967 = vmatprep.subr.mxu1 %v827_v25  ;;  %897 = vmatpush2.msra.mxu0 %v762_v26  ;;  %v673_v13 = vld [vmem:[#allocation4 + $0x2e8] sm:$0xff]  ;;  %v608_v14 = vld [vmem:[#allocation4 + $0xe0] sm:$0xff]  ;;  %v607_v16 = vld [vmem:[#allocation4 + $0xd8] sm:$0xff] }
  0x90   : > { %968 = vmatpush2.msra.mxu1 %v826_v27  ;;  %898 = vmatprep.subr.mxu0 %v761_v28  ;;  %v672_v15 = vld [vmem:[#allocation4 + $0x2e0] sm:$0xff]  ;;  %v671_v17 = vld [vmem:[#allocation4 + $0x2d8] sm:$0xff]  ;;  %v606_v18 = vld [vmem:[#allocation4 + $0xd0] sm:$0xff] }
  0x91   : > { %969 = vmatprep.subr.mxu1 %v825_v29  ;;  %899 = vmatpush2.msra.mxu0 %v760_v30  ;;  %v670_v19 = vld [vmem:[#allocation4 + $0x2d0] sm:$0xff]  ;;  %v605_v20 = vld [vmem:[#allocation4 + $0xc8] sm:$0xff]  ;;  %v604_v22 = vld [vmem:[#allocation4 + $0xc0] sm:$0xff] }
  0x92   : > { %970 = vmatpush2.msra.mxu1 %v824_v31  ;;  %900 = vmatprep.subr.mxu0 %v759_v32  ;;  %v669_v21 = vld [vmem:[#allocation4 + $0x2c8] sm:$0xff]  ;;  %v668_v23 = vld [vmem:[#allocation4 + $0x2c0] sm:$0xff]  ;;  %v603_v24 = vld [vmem:[#allocation4 + $0xb8] sm:$0xff] }
  0x93   : > { %971 = vmatprep.subr.mxu1 %v823_v33  ;;  %901 = vmatpush2.msra.mxu0 %v758_v34  ;;  %v667_v25 = vld [vmem:[#allocation4 + $0x2b8] sm:$0xff]  ;;  %v602_v26 = vld [vmem:[#allocation4 + $0xb0] sm:$0xff]  ;;  %v601_v28 = vld [vmem:[#allocation4 + $0xa8] sm:$0xff] }
  0x94   : > { %972 = vmatpush2.msra.mxu1 %v822_v35  ;;  %902 = vmatprep.subr.mxu0 %v757_v36  ;;  %v666_v27 = vld [vmem:[#allocation4 + $0x2b0] sm:$0xff]  ;;  %v665_v29 = vld [vmem:[#allocation4 + $0x2a8] sm:$0xff]  ;;  %v600_v30 = vld [vmem:[#allocation4 + $0xa0] sm:$0xff] }
  0x95   : > { %973 = vmatprep.subr.mxu1 %v821_v37  ;;  %903 = vmatpush2.msra.mxu0 %v756_v38  ;;  %v664_v31 = vld [vmem:[#allocation4 + $0x2a0] sm:$0xff]  ;;  %v599_v32 = vld [vmem:[#allocation4 + $0x98] sm:$0xff]  ;;  %v598_v34 = vld [vmem:[#allocation4 + $0x90] sm:$0xff] }
  0x96   : > { %974 = vmatpush2.msra.mxu1 %v820_v39  ;;  %904 = vmatprep.subr.mxu0 %v755_v40  ;;  %v663_v33 = vld [vmem:[#allocation4 + $0x298] sm:$0xff]  ;;  %v662_v35 = vld [vmem:[#allocation4 + $0x290] sm:$0xff]  ;;  %v597_v36 = vld [vmem:[#allocation4 + $0x88] sm:$0xff] }
  0x97   : > { %975 = vmatprep.subr.mxu1 %v819_v41  ;;  %905 = vmatpush2.msra.mxu0 %v754_v42  ;;  %v661_v37 = vld [vmem:[#allocation4 + $0x288] sm:$0xff]  ;;  %v596_v38 = vld [vmem:[#allocation4 + $0x80] sm:$0xff]  ;;  %v595_v40 = vld [vmem:[#allocation4 + $0x78] sm:$0xff] }
  0x98   : > { %976 = vmatpush2.msra.mxu1 %v818_v43  ;;  %906 = vmatprep.subr.mxu0 %v753_v44  ;;  %v660_v39 = vld [vmem:[#allocation4 + $0x280] sm:$0xff]  ;;  %v659_v41 = vld [vmem:[#allocation4 + $0x278] sm:$0xff]  ;;  %v594_v42 = vld [vmem:[#allocation4 + $0x70] sm:$0xff] }
  0x99   : > { %977 = vmatprep.subr.mxu1 %v817_v45  ;;  %907 = vmatpush2.msra.mxu0 %v752_v46  ;;  %v658_v43 = vld [vmem:[#allocation4 + $0x270] sm:$0xff]  ;;  %v593_v44 = vld [vmem:[#allocation4 + $0x68] sm:$0xff]  ;;  %v592_v46 = vld [vmem:[#allocation4 + $0x60] sm:$0xff] }
  0x9a   : > { %978 = vmatpush2.msra.mxu1 %v816_v47  ;;  %908 = vmatprep.subr.mxu0 %v751_v48  ;;  %v657_v45 = vld [vmem:[#allocation4 + $0x268] sm:$0xff]  ;;  %v656_v47 = vld [vmem:[#allocation4 + $0x260] sm:$0xff]  ;;  %v591_v48 = vld [vmem:[#allocation4 + $0x58] sm:$0xff] }
  0x9b   : > { %979 = vmatprep.subr.mxu1 %v815_v49  ;;  %909 = vmatpush2.msra.mxu0 %v750_v50  ;;  %v655_v49 = vld [vmem:[#allocation4 + $0x258] sm:$0xff]  ;;  %v590_v50 = vld [vmem:[#allocation4 + $0x50] sm:$0xff]  ;;  %v585_v60 = vld [vmem:[#allocation4 + $0x28] sm:$0xff] }
  0x9c   : > { %980 = vmatpush2.msra.mxu1 %v814_v51  ;;  %910 = vmatprep.subr.mxu0 %v749_v52  ;;  %v654_v51 = vld [vmem:[#allocation4 + $0x250] sm:$0xff]  ;;  %v589_v52 = vld [vmem:[#allocation4 + $0x48] sm:$0xff]  ;;  %v651_v57 = vld [vmem:[#allocation4 + $0x238] sm:$0xff] }
  0x9d   : > { %981 = vmatprep.subr.mxu1 %v813_v53  ;;  %911 = vmatpush2.msra.mxu0 %v748_v54  ;;  %v653_v53 = vld [vmem:[#allocation4 + $0x248] sm:$0xff]  ;;  %v588_v54 = vld [vmem:[#allocation4 + $0x40] sm:$0xff] }
  0x9e   : > { %982 = vmatpush2.msra.mxu1 %v812_v55  ;;  %912 = vmatprep.subr.mxu0 %v747_v56  ;;  %v652_v55 = vld [vmem:[#allocation4 + $0x240] sm:$0xff]  ;;  %v587_v56 = vld [vmem:[#allocation4 + $0x38] sm:$0xff] }
  0x9f   : > { %983 = vmatprep.subr.mxu1 %v811_v58  ;;  %913 = vmatpush2.msra.mxu0 %v746_v59  ;;  %v586_v58 = vld [vmem:[#allocation4 + $0x30] sm:$0xff]  ;;  %v584_v62 = vld [vmem:[#allocation4 + $0x20] sm:$0xff] }
  0xa0   : > { %984 = vmatpush2.msra.mxu1 %v810_v61  ;;  %914 = vmatprep.subr.mxu0 %v745_v0  ;;  %v650_v59 = vld [vmem:[#allocation4 + $0x230] sm:$0xff]  ;;  %v649_v61 = vld [vmem:[#allocation4 + $0x228] sm:$0xff]  ;;  %v648_v63 = vld [vmem:[#allocation4 + $0x220] sm:$0xff] }
  0xa1   : > { %985 = vmatprep.subr.mxu1 %v809_v1  ;;  %915 = vmatpush2.msra.mxu0 %v744_v3  ;;  %v583_v0 = vld [vmem:[#allocation4 + $0x18] sm:$0xff]  ;;  %v646_v3 = vld [vmem:[#allocation4 + $0x210] sm:$0xff] }
  0xa2   : > { %916 = vmatprep.mubr.f32.mxu0 %v845_v2  ;;  %986 = vmatpush2.msra.mxu1 %v808_v5  ;;  %v647_v1 = vld [vmem:[#allocation4 + $0x218] sm:$0xff]  ;;  %v582_v2 = vld [vmem:[#allocation4 + $0x10] sm:$0xff]  ;;  %v645_v5 = vld [vmem:[#allocation4 + $0x208] sm:$0xff] }
  0xa3   : > { %987 = vmatprep.mubr.f32.mxu1 %v847_v4  ;;  %917 = vmatmul.mubr.f32.vlgmr.msra.gmra.mxu0 %v844_v6  ;;  %v581_v4 = vld [vmem:[#allocation4 + $0x8] sm:$0xff]  ;;  %v580_v6 = vld [vmem:[#allocation4] sm:$0xff] }
  0xa4   : > { %988 = vmatmul.mubr.f32.vlgmr.msra.gmra.mxu1 %v846_v7  ;;  %994 = vmatprep.subr.mxu0 %v611_v8  ;;  %v644_v7 = vld [vmem:[#allocation4 + $0x200] sm:$0xff]  ;;  %v643_v8 = vld [vmem:[#allocation4 + $0x1f8] sm:$0xff] }
  0xa5   : > { %1065 = vmatprep.subr.mxu1 %v675_v9  ;;  %995 = vmatpush1.msra.mxu0 %v610_v10  ;;  %v707_v9 = vld [vmem:[#allocation4 + $0x3f8] sm:$0xff]  ;;  %v642_v10 = vld [vmem:[#allocation4 + $0x1f0] sm:$0xff] }
  0xa6   : > { %1066 = vmatpush1.msra.mxu1 %v674_v11  ;;  %996 = vmatprep.subr.mxu0 %v609_v12  ;;  %v706_v11 = vld [vmem:[#allocation4 + $0x3f0] sm:$0xff]  ;;  %v641_v12 = vld [vmem:[#allocation4 + $0x1e8] sm:$0xff] }
  0xa7   : > { %1067 = vmatprep.subr.mxu1 %v673_v13  ;;  %997 = vmatpush1.msra.mxu0 %v608_v14  ;;  %v705_v13 = vld [vmem:[#allocation4 + $0x3e8] sm:$0xff]  ;;  %v640_v14 = vld [vmem:[#allocation4 + $0x1e0] sm:$0xff] }
  0xa8   : > { %1068 = vmatpush1.msra.mxu1 %v672_v15  ;;  %998 = vmatprep.subr.mxu0 %v607_v16  ;;  %v704_v15 = vld [vmem:[#allocation4 + $0x3e0] sm:$0xff]  ;;  %v639_v16 = vld [vmem:[#allocation4 + $0x1d8] sm:$0xff] }
  0xa9   : > { %1069 = vmatprep.subr.mxu1 %v671_v17  ;;  %999 = vmatpush1.msra.mxu0 %v606_v18  ;;  %v703_v17 = vld [vmem:[#allocation4 + $0x3d8] sm:$0xff]  ;;  %v638_v18 = vld [vmem:[#allocation4 + $0x1d0] sm:$0xff] }
  0xaa   : > { %1070 = vmatpush1.msra.mxu1 %v670_v19  ;;  %1000 = vmatprep.subr.mxu0 %v605_v20  ;;  %v702_v19 = vld [vmem:[#allocation4 + $0x3d0] sm:$0xff]  ;;  %v637_v20 = vld [vmem:[#allocation4 + $0x1c8] sm:$0xff] }
  0xab   : > { %1071 = vmatprep.subr.mxu1 %v669_v21  ;;  %1001 = vmatpush1.msra.mxu0 %v604_v22  ;;  %v701_v21 = vld [vmem:[#allocation4 + $0x3c8] sm:$0xff]  ;;  %v636_v22 = vld [vmem:[#allocation4 + $0x1c0] sm:$0xff] }
  0xac   : > { %1072 = vmatpush1.msra.mxu1 %v668_v23  ;;  %1002 = vmatprep.subr.mxu0 %v603_v24  ;;  %v700_v23 = vld [vmem:[#allocation4 + $0x3c0] sm:$0xff]  ;;  %v635_v24 = vld [vmem:[#allocation4 + $0x1b8] sm:$0xff] }
  0xad   : > { %1073 = vmatprep.subr.mxu1 %v667_v25  ;;  %1003 = vmatpush1.msra.mxu0 %v602_v26  ;;  %v699_v25 = vld [vmem:[#allocation4 + $0x3b8] sm:$0xff]  ;;  %v634_v26 = vld [vmem:[#allocation4 + $0x1b0] sm:$0xff] }
  0xae   : > { %1074 = vmatpush1.msra.mxu1 %v666_v27  ;;  %1004 = vmatprep.subr.mxu0 %v601_v28  ;;  %v698_v27 = vld [vmem:[#allocation4 + $0x3b0] sm:$0xff]  ;;  %v633_v28 = vld [vmem:[#allocation4 + $0x1a8] sm:$0xff] }
  0xaf   : > { %1075 = vmatprep.subr.mxu1 %v665_v29  ;;  %1005 = vmatpush1.msra.mxu0 %v600_v30  ;;  %v697_v29 = vld [vmem:[#allocation4 + $0x3a8] sm:$0xff]  ;;  %v632_v30 = vld [vmem:[#allocation4 + $0x1a0] sm:$0xff] }
  0xb0   : > { %1076 = vmatpush1.msra.mxu1 %v664_v31  ;;  %1006 = vmatprep.subr.mxu0 %v599_v32  ;;  %v696_v31 = vld [vmem:[#allocation4 + $0x3a0] sm:$0xff]  ;;  %v631_v32 = vld [vmem:[#allocation4 + $0x198] sm:$0xff] }
  0xb1   : > { %1077 = vmatprep.subr.mxu1 %v663_v33  ;;  %1007 = vmatpush1.msra.mxu0 %v598_v34  ;;  %v695_v33 = vld [vmem:[#allocation4 + $0x398] sm:$0xff]  ;;  %v630_v34 = vld [vmem:[#allocation4 + $0x190] sm:$0xff] }
  0xb2   : > { %1078 = vmatpush1.msra.mxu1 %v662_v35  ;;  %1008 = vmatprep.subr.mxu0 %v597_v36  ;;  %v694_v35 = vld [vmem:[#allocation4 + $0x390] sm:$0xff]  ;;  %v629_v36 = vld [vmem:[#allocation4 + $0x188] sm:$0xff] }
  0xb3   : > { %1079 = vmatprep.subr.mxu1 %v661_v37  ;;  %1009 = vmatpush1.msra.mxu0 %v596_v38  ;;  %v693_v37 = vld [vmem:[#allocation4 + $0x388] sm:$0xff]  ;;  %v628_v38 = vld [vmem:[#allocation4 + $0x180] sm:$0xff] }
  0xb4   : > { %1080 = vmatpush1.msra.mxu1 %v660_v39  ;;  %1010 = vmatprep.subr.mxu0 %v595_v40  ;;  %v692_v39 = vld [vmem:[#allocation4 + $0x380] sm:$0xff]  ;;  %v627_v40 = vld [vmem:[#allocation4 + $0x178] sm:$0xff] }
  0xb5   : > { %1081 = vmatprep.subr.mxu1 %v659_v41  ;;  %1011 = vmatpush1.msra.mxu0 %v594_v42  ;;  %v691_v41 = vld [vmem:[#allocation4 + $0x378] sm:$0xff]  ;;  %v626_v42 = vld [vmem:[#allocation4 + $0x170] sm:$0xff] }
  0xb6   : > { %1082 = vmatpush1.msra.mxu1 %v658_v43  ;;  %1012 = vmatprep.subr.mxu0 %v593_v44  ;;  %v690_v43 = vld [vmem:[#allocation4 + $0x370] sm:$0xff]  ;;  %v625_v44 = vld [vmem:[#allocation4 + $0x168] sm:$0xff] }
  0xb7   : > { %1083 = vmatprep.subr.mxu1 %v657_v45  ;;  %1013 = vmatpush1.msra.mxu0 %v592_v46  ;;  %v689_v45 = vld [vmem:[#allocation4 + $0x368] sm:$0xff]  ;;  %v624_v46 = vld [vmem:[#allocation4 + $0x160] sm:$0xff] }
  0xb8   : > { %1084 = vmatpush1.msra.mxu1 %v656_v47  ;;  %1014 = vmatprep.subr.mxu0 %v591_v48  ;;  %v688_v47 = vld [vmem:[#allocation4 + $0x360] sm:$0xff]  ;;  %v623_v48 = vld [vmem:[#allocation4 + $0x158] sm:$0xff] }
  0xb9   : > { %1085 = vmatprep.subr.mxu1 %v655_v49  ;;  %1015 = vmatpush1.msra.mxu0 %v590_v50  ;;  %v687_v49 = vld [vmem:[#allocation4 + $0x358] sm:$0xff]  ;;  %v622_v50 = vld [vmem:[#allocation4 + $0x150] sm:$0xff] }
  0xba   : > { %1086 = vmatpush1.msra.mxu1 %v654_v51  ;;  %1016 = vmatprep.subr.mxu0 %v589_v52  ;;  %v686_v51 = vld [vmem:[#allocation4 + $0x350] sm:$0xff]  ;;  %v621_v52 = vld [vmem:[#allocation4 + $0x148] sm:$0xff] }
  0xbb   : > { %1087 = vmatprep.subr.mxu1 %v653_v53  ;;  %1017 = vmatpush1.msra.mxu0 %v588_v54  ;;  %v685_v53 = vld [vmem:[#allocation4 + $0x348] sm:$0xff]  ;;  %v620_v54 = vld [vmem:[#allocation4 + $0x140] sm:$0xff] }
  0xbc   : > { %1088 = vmatpush1.msra.mxu1 %v652_v55  ;;  %1018 = vmatprep.subr.mxu0 %v587_v56  ;;  %v684_v55 = vld [vmem:[#allocation4 + $0x340] sm:$0xff]  ;;  %v619_v56 = vld [vmem:[#allocation4 + $0x138] sm:$0xff] }
  0xbd   : > { %1089 = vmatprep.subr.mxu1 %v651_v57  ;;  %1019 = vmatpush1.msra.mxu0 %v586_v58  ;;  %v683_v57 = vld [vmem:[#allocation4 + $0x338] sm:$0xff]  ;;  %v618_v58 = vld [vmem:[#allocation4 + $0x130] sm:$0xff] }
  0xbe   : > { %1090 = vmatpush1.msra.mxu1 %v650_v59  ;;  %1020 = vmatprep.subr.mxu0 %v585_v60  ;;  %v682_v59 = vld [vmem:[#allocation4 + $0x330] sm:$0xff]  ;;  %v617_v60 = vld [vmem:[#allocation4 + $0x128] sm:$0xff] }
  0xbf   : > { %1091 = vmatprep.subr.mxu1 %v649_v61  ;;  %1021 = vmatpush1.msra.mxu0 %v584_v62  ;;  %v681_v61 = vld [vmem:[#allocation4 + $0x328] sm:$0xff]  ;;  %v616_v62 = vld [vmem:[#allocation4 + $0x120] sm:$0xff] }
  0xc0   : > { %1092 = vmatpush1.msra.mxu1 %v648_v63  ;;  %1022 = vmatprep.subr.mxu0 %v583_v0  ;;  %v680_v63 = vld [vmem:[#allocation4 + $0x320] sm:$0xff]  ;;  %v615_v0 = vld [vmem:[#allocation4 + $0x118] sm:$0xff] }
  0xc1   : > { %1093 = vmatprep.subr.mxu1 %v647_v1  ;;  %1023 = vmatpush1.msra.mxu0 %v582_v2  ;;  %v679_v1 = vld [vmem:[#allocation4 + $0x318] sm:$0xff]  ;;  %v614_v2 = vld [vmem:[#allocation4 + $0x110] sm:$0xff] }
  0xc2   : > { %1094 = vmatpush1.msra.mxu1 %v646_v3  ;;  %1024 = vmatprep.subr.mxu0 %v581_v4  ;;  %v678_v3 = vld [vmem:[#allocation4 + $0x310] sm:$0xff]  ;;  %v613_v4 = vld [vmem:[#allocation4 + $0x108] sm:$0xff] }
  0xc3   : > { %1095 = vmatprep.subr.mxu1 %v645_v5  ;;  %1025 = vmatpush1.msra.mxu0 %v580_v6  ;;  %v677_v5 = vld [vmem:[#allocation4 + $0x308] sm:$0xff]  ;;  %v612_v6 = vld [vmem:[#allocation4 + $0x100] sm:$0xff] }
  0xc4   : > { %1096 = vmatpush1.msra.mxu1 %v644_v7  ;;  %1026 = vmatprep.subr.mxu0 %v643_v8  ;;  %v577_v7 = vld [vmem:[%s2702_s27 + $0x8] sm:$0xf]  ;;  %v676_v8 = vld [vmem:[#allocation4 + $0x300] sm:$0xff] }
  0xc5   : > { %1097 = vmatprep.subr.mxu1 %v707_v9  ;;  %1027 = vmatpush2.msra.mxu0 %v642_v10  ;;  %v579_v9 = vld [vmem:[%s2702_s27 + $0x18] sm:$0xf]  ;;  %v576_v10 = vld [vmem:[%s2702_s27] sm:$0xf] }
  0xc6   : > { %1098 = vmatpush2.msra.mxu1 %v706_v11  ;;  %1028 = vmatprep.subr.mxu0 %v641_v12  ;;  %v578_v11 = vld [vmem:[%s2702_s27 + $0x10] sm:$0xf]  ;;  %v1187_v12 = vld [vmem:[#allocation9 + $0xf8] sm:$0xff]  ;;  %s575_s27 = scalar_lea.vmem %s2946_s14, %s2031_s30  ;;  %s566_s30 = scalar_lea.vmem [#allocation13], %s565_s17 }
  0xc7   : > { %1099 = vmatprep.subr.mxu1 %v705_v13  ;;  %1029 = vmatpush2.msra.mxu0 %v640_v14  ;;  %v1186_v13 = vld [vmem:[#allocation9 + $0xf0] sm:$0xff]  ;;  %v1253_v14 = vld [vmem:[#allocation10 + $0xf8] sm:$0xff]  ;;  %s1886_s23 = sshll.u32 %s566_s30, 4  ;;  %s1887_s23 = int_to_ptr.vmem [resolvable:$true] %s1886_s23 }
  0xc8   : > { %1100 = vmatpush2.msra.mxu1 %v704_v15  ;;  %1030 = vmatprep.subr.mxu0 %v639_v16  ;;  %v1185_v15 = vld [vmem:[#allocation9 + $0xe8] sm:$0xff]  ;;  %v1252_v16 = vld [vmem:[#allocation10 + $0xf0] sm:$0xff]  ;;  %s2398_s18 = scalar_lea.vmem %s1887_s23, 16  ;;  %p2405_p7 = scmp.lt.s32.totalorder %s1887_s23, %s2403_s24 }
  0xc9   : > { %1101 = vmatprep.subr.mxu1 %v703_v17  ;;  %1031 = vmatpush2.msra.mxu0 %v638_v18  ;;  %v1184_v17 = vld [vmem:[#allocation9 + $0xe0] sm:$0xff]  ;;  %v1251_v18 = vld [vmem:[#allocation10 + $0xe8] sm:$0xff]  ;;  %p2399_p4 = scmp.ne.s32.totalorder %s1887_s23, %s2398_s18  ;;  %p2406_p11 = scmp.lt.s32.totalorder %s2404_s21, %s2398_s18 }
  0xca   : > { %1102 = vmatpush2.msra.mxu1 %v702_v19  ;;  %1032 = vmatprep.subr.mxu0 %v637_v20  ;;  %v1183_v19 = vld [vmem:[#allocation9 + $0xd8] sm:$0xff]  ;;  %v1250_v20 = vld [vmem:[#allocation10 + $0xe0] sm:$0xff] }
  0xcb   : > { %1103 = vmatprep.subr.mxu1 %v701_v21  ;;  %1033 = vmatpush2.msra.mxu0 %v636_v22  ;;  %v1182_v21 = vld [vmem:[#allocation9 + $0xd0] sm:$0xff]  ;;  %v1249_v22 = vld [vmem:[#allocation10 + $0xd8] sm:$0xff]  ;;  %p2400_p9 = pnand %p2399_p4, %p2602_p5  ;;  %p2407_p0 = por %p2406_p11, %p2405_p7 }
  0xcc   : > { %1104 = vmatpush2.msra.mxu1 %v700_v23  ;;  %1034 = vmatprep.subr.mxu0 %v635_v24  ;;  %v1181_v23 = vld [vmem:[#allocation9 + $0xc8] sm:$0xff]  ;;  %v1248_v24 = vld [vmem:[#allocation10 + $0xd0] sm:$0xff] }
  0xcd   : > { %1105 = vmatprep.subr.mxu1 %v699_v25  ;;  %1035 = vmatpush2.msra.mxu0 %v634_v26  ;;  %v1247_v25 = vld [vmem:[#allocation10 + $0xc8] sm:$0xff]  ;;  %v1180_v26 = vld [vmem:[#allocation9 + $0xc0] sm:$0xff]  ;;  %p2401_p8 = pneg %p2400_p9 }
  0xce   : > { %1106 = vmatpush2.msra.mxu1 %v698_v27  ;;  %1036 = vmatprep.subr.mxu0 %v633_v28  ;;  %v1246_v27 = vld [vmem:[#allocation10 + $0xc0] sm:$0xff]  ;;  %v1179_v28 = vld [vmem:[#allocation9 + $0xb8] sm:$0xff] }
  0xcf   : > { %1107 = vmatprep.subr.mxu1 %v697_v29  ;;  %1037 = vmatpush2.msra.mxu0 %v632_v30  ;;  %v1245_v29 = vld [vmem:[#allocation10 + $0xb8] sm:$0xff]  ;;  %v1178_v30 = vld [vmem:[#allocation9 + $0xb0] sm:$0xff]  ;;  %p2408_p13 = pnand %p2407_p0, %p2401_p8 }
  0xd0   : > { %1108 = vmatpush2.msra.mxu1 %v696_v31  ;;  %1038 = vmatprep.subr.mxu0 %v631_v32  ;;  %v1244_v31 = vld [vmem:[#allocation10 + $0xb0] sm:$0xff]  ;;  %v1177_v32 = vld [vmem:[#allocation9 + $0xa8] sm:$0xff] }
  0xd1   : > { %1109 = vmatprep.subr.mxu1 %v695_v33  ;;  %1039 = vmatpush2.msra.mxu0 %v630_v34  ;;  %v1243_v33 = vld [vmem:[#allocation10 + $0xa8] sm:$0xff]  ;;  %v1176_v34 = vld [vmem:[#allocation9 + $0xa0] sm:$0xff] }
  0xd2   : > { %1110 = vmatpush2.msra.mxu1 %v694_v35  ;;  %1040 = vmatprep.subr.mxu0 %v629_v36  ;;  %v1242_v35 = vld [vmem:[#allocation10 + $0xa0] sm:$0xff]  ;;  %v1175_v36 = vld [vmem:[#allocation9 + $0x98] sm:$0xff] }
  0xd3   : > { %1111 = vmatprep.subr.mxu1 %v693_v37  ;;  %1041 = vmatpush2.msra.mxu0 %v628_v38  ;;  %v1241_v37 = vld [vmem:[#allocation10 + $0x98] sm:$0xff]  ;;  %v1174_v38 = vld [vmem:[#allocation9 + $0x90] sm:$0xff] }
  0xd4   : > { %1112 = vmatpush2.msra.mxu1 %v692_v39  ;;  %1042 = vmatprep.subr.mxu0 %v627_v40  ;;  %v1240_v39 = vld [vmem:[#allocation10 + $0x90] sm:$0xff]  ;;  %v1173_v40 = vld [vmem:[#allocation9 + $0x88] sm:$0xff] }
  0xd5   : > { %1113 = vmatprep.subr.mxu1 %v691_v41  ;;  %1043 = vmatpush2.msra.mxu0 %v626_v42  ;;  %v1239_v41 = vld [vmem:[#allocation10 + $0x88] sm:$0xff]  ;;  %v1172_v42 = vld [vmem:[#allocation9 + $0x80] sm:$0xff] }
  0xd6   : > { %1114 = vmatpush2.msra.mxu1 %v690_v43  ;;  %1044 = vmatprep.subr.mxu0 %v625_v44  ;;  %v1238_v43 = vld [vmem:[#allocation10 + $0x80] sm:$0xff]  ;;  %v1171_v44 = vld [vmem:[#allocation9 + $0x78] sm:$0xff] }
  0xd7   : > { %1115 = vmatprep.subr.mxu1 %v689_v45  ;;  %1045 = vmatpush2.msra.mxu0 %v624_v46  ;;  %v1237_v45 = vld [vmem:[#allocation10 + $0x78] sm:$0xff]  ;;  %v1170_v46 = vld [vmem:[#allocation9 + $0x70] sm:$0xff] }
  0xd8   : > { %1116 = vmatpush2.msra.mxu1 %v688_v47  ;;  %1046 = vmatprep.subr.mxu0 %v623_v48  ;;  %v1236_v47 = vld [vmem:[#allocation10 + $0x70] sm:$0xff]  ;;  %v1169_v48 = vld [vmem:[#allocation9 + $0x68] sm:$0xff] }
  0xd9   : > { %1117 = vmatprep.subr.mxu1 %v687_v49  ;;  %1047 = vmatpush2.msra.mxu0 %v622_v50  ;;  %v1235_v49 = vld [vmem:[#allocation10 + $0x68] sm:$0xff]  ;;  %v1168_v50 = vld [vmem:[#allocation9 + $0x60] sm:$0xff] }
  0xda   : > { %1118 = vmatpush2.msra.mxu1 %v686_v51  ;;  %1048 = vmatprep.subr.mxu0 %v621_v52  ;;  %v1234_v51 = vld [vmem:[#allocation10 + $0x60] sm:$0xff]  ;;  %v1167_v52 = vld [vmem:[#allocation9 + $0x58] sm:$0xff] }
  0xdb   : > { %1119 = vmatprep.subr.mxu1 %v685_v53  ;;  %1049 = vmatpush2.msra.mxu0 %v620_v54  ;;  %v1233_v53 = vld [vmem:[#allocation10 + $0x58] sm:$0xff]  ;;  %v1166_v54 = vld [vmem:[#allocation9 + $0x50] sm:$0xff] }
  0xdc   : > { %1120 = vmatpush2.msra.mxu1 %v684_v55  ;;  %1050 = vmatprep.subr.mxu0 %v619_v56  ;;  %v1232_v55 = vld [vmem:[#allocation10 + $0x50] sm:$0xff]  ;;  %v1165_v56 = vld [vmem:[#allocation9 + $0x48] sm:$0xff] }
  0xdd   : > { %1121 = vmatprep.subr.mxu1 %v683_v57  ;;  %1051 = vmatpush2.msra.mxu0 %v618_v58  ;;  %v1231_v57 = vld [vmem:[#allocation10 + $0x48] sm:$0xff]  ;;  %v1164_v58 = vld [vmem:[#allocation9 + $0x40] sm:$0xff] }
  0xde   : > { %1122 = vmatpush2.msra.mxu1 %v682_v59  ;;  %1052 = vmatprep.subr.mxu0 %v617_v60  ;;  %v1230_v59 = vld [vmem:[#allocation10 + $0x40] sm:$0xff]  ;;  %v1163_v60 = vld [vmem:[#allocation9 + $0x38] sm:$0xff] }
  0xdf   : > { %1123 = vmatprep.subr.mxu1 %v681_v61  ;;  %1053 = vmatpush2.msra.mxu0 %v616_v62  ;;  %v1229_v61 = vld [vmem:[#allocation10 + $0x38] sm:$0xff]  ;;  %v1162_v62 = vld [vmem:[#allocation9 + $0x30] sm:$0xff] }
  0xe0   : > { %1124 = vmatpush2.msra.mxu1 %v680_v63  ;;  %1054 = vmatprep.subr.mxu0 %v615_v0  ;;  %v1228_v63 = vld [vmem:[#allocation10 + $0x30] sm:$0xff]  ;;  %v1161_v0 = vld [vmem:[#allocation9 + $0x28] sm:$0xff] }
  0xe1   : > { %1125 = vmatprep.subr.mxu1 %v679_v1  ;;  %1055 = vmatpush2.msra.mxu0 %v614_v2  ;;  %v1227_v1 = vld [vmem:[#allocation10 + $0x28] sm:$0xff]  ;;  %v1160_v2 = vld [vmem:[#allocation9 + $0x20] sm:$0xff] }
  0xe2   : > { %1126 = vmatpush2.msra.mxu1 %v678_v3  ;;  %1056 = vmatprep.subr.mxu0 %v613_v4  ;;  %v1226_v3 = vld [vmem:[#allocation10 + $0x20] sm:$0xff]  ;;  %v1159_v4 = vld [vmem:[#allocation9 + $0x18] sm:$0xff] }
  0xe3   : > { %1127 = vmatprep.subr.mxu1 %v677_v5  ;;  %1057 = vmatpush2.msra.mxu0 %v612_v6  ;;  %v1225_v5 = vld [vmem:[#allocation10 + $0x18] sm:$0xff]  ;;  %v1158_v6 = vld [vmem:[#allocation9 + $0x10] sm:$0xff] }
  0xe4   : > { %1058 = vmatprep.mubr.f32.mxu0 %v577_v7  ;;  %1128 = vmatpush2.msra.mxu1 %v676_v8  ;;  %v1224_v7 = vld [vmem:[#allocation10 + $0x10] sm:$0xff]  ;;  %v1157_v8 = vld [vmem:[#allocation9 + $0x8] sm:$0xff] }
  0xe5   : > { %1129 = vmatprep.mubr.f32.mxu1 %v579_v9  ;;  %1059 = vmatmul.mubr.f32.vlgmr.msra.gmra.mxu0 %v576_v10  ;;  %v1223_v9 = vld [vmem:[#allocation10 + $0x8] sm:$0xff]  ;;  %v1156_v10 = vld [vmem:[#allocation9] sm:$0xff] }
  0xe6   : > { %1130 = vmatmul.mubr.f32.vlgmr.msra.gmra.mxu1 %v578_v11  ;;  %1363 = vmatprep.subr.mxu1 %v1187_v12  ;;  %v1222_v11 = vld [vmem:[#allocation10] sm:$0xff]  ;;  %v1219_v12 = vld [vmem:[#allocation9 + $0x1f8] sm:$0xff] }
  0xe7   : > { %1292 = vmatprep.subr.mxu0 %v1253_v14  ;;  %1364 = vmatpush1.msra.mxu1 %v1186_v13  ;;  %v1285_v13 = vld [vmem:[#allocation10 + $0x1f8] sm:$0xff]  ;;  %v1218_v14 = vld [vmem:[#allocation9 + $0x1f0] sm:$0xff] }
  0xe8   : > { %1293 = vmatpush1.msra.mxu0 %v1252_v16  ;;  %1365 = vmatprep.subr.mxu1 %v1185_v15  ;;  %v1284_v15 = vld [vmem:[#allocation10 + $0x1f0] sm:$0xff]  ;;  %v1217_v16 = vld [vmem:[#allocation9 + $0x1e8] sm:$0xff] }
  0xe9   : > { %1294 = vmatprep.subr.mxu0 %v1251_v18  ;;  %1366 = vmatpush1.msra.mxu1 %v1184_v17  ;;  %v1283_v17 = vld [vmem:[#allocation10 + $0x1e8] sm:$0xff]  ;;  %v1216_v18 = vld [vmem:[#allocation9 + $0x1e0] sm:$0xff] }
  0xea   : > { %1295 = vmatpush1.msra.mxu0 %v1250_v20  ;;  %1367 = vmatprep.subr.mxu1 %v1183_v19  ;;  %v1282_v19 = vld [vmem:[#allocation10 + $0x1e0] sm:$0xff]  ;;  %v1215_v20 = vld [vmem:[#allocation9 + $0x1d8] sm:$0xff] }
  0xeb   : > { %1296 = vmatprep.subr.mxu0 %v1249_v22  ;;  %1368 = vmatpush1.msra.mxu1 %v1182_v21  ;;  %v1281_v21 = vld [vmem:[#allocation10 + $0x1d8] sm:$0xff]  ;;  %v1214_v22 = vld [vmem:[#allocation9 + $0x1d0] sm:$0xff] }
  0xec   : > { %1297 = vmatpush1.msra.mxu0 %v1248_v24  ;;  %1369 = vmatprep.subr.mxu1 %v1181_v23  ;;  %v1280_v23 = vld [vmem:[#allocation10 + $0x1d0] sm:$0xff]  ;;  %v1213_v24 = vld [vmem:[#allocation9 + $0x1c8] sm:$0xff] }
  0xed   : > { %1298 = vmatprep.subr.mxu0 %v1247_v25  ;;  %1370 = vmatpush1.msra.mxu1 %v1180_v26  ;;  %v1279_v25 = vld [vmem:[#allocation10 + $0x1c8] sm:$0xff]  ;;  %v1212_v26 = vld [vmem:[#allocation9 + $0x1c0] sm:$0xff] }
  0xee   : > { %1299 = vmatpush1.msra.mxu0 %v1246_v27  ;;  %1371 = vmatprep.subr.mxu1 %v1179_v28  ;;  %v1278_v27 = vld [vmem:[#allocation10 + $0x1c0] sm:$0xff]  ;;  %v1211_v28 = vld [vmem:[#allocation9 + $0x1b8] sm:$0xff] }
  0xef   : > { %1300 = vmatprep.subr.mxu0 %v1245_v29  ;;  %1372 = vmatpush1.msra.mxu1 %v1178_v30  ;;  %v1277_v29 = vld [vmem:[#allocation10 + $0x1b8] sm:$0xff]  ;;  %v1210_v30 = vld [vmem:[#allocation9 + $0x1b0] sm:$0xff] }
  0xf0   : > { %1301 = vmatpush1.msra.mxu0 %v1244_v31  ;;  %1373 = vmatprep.subr.mxu1 %v1177_v32  ;;  %v1276_v31 = vld [vmem:[#allocation10 + $0x1b0] sm:$0xff]  ;;  %v1209_v32 = vld [vmem:[#allocation9 + $0x1a8] sm:$0xff] }
  0xf1   : > { %1302 = vmatprep.subr.mxu0 %v1243_v33  ;;  %1374 = vmatpush1.msra.mxu1 %v1176_v34  ;;  %v1208_v33 = vld [vmem:[#allocation9 + $0x1a0] sm:$0xff]  ;;  %v1275_v34 = vld [vmem:[#allocation10 + $0x1a8] sm:$0xff] }
  0xf2   : > { %1303 = vmatpush1.msra.mxu0 %v1242_v35  ;;  %1375 = vmatprep.subr.mxu1 %v1175_v36  ;;  %v1207_v35 = vld [vmem:[#allocation9 + $0x198] sm:$0xff]  ;;  %v1274_v36 = vld [vmem:[#allocation10 + $0x1a0] sm:$0xff] }
  0xf3   : > { %1304 = vmatprep.subr.mxu0 %v1241_v37  ;;  %1376 = vmatpush1.msra.mxu1 %v1174_v38  ;;  %v1206_v37 = vld [vmem:[#allocation9 + $0x190] sm:$0xff]  ;;  %v1273_v38 = vld [vmem:[#allocation10 + $0x198] sm:$0xff] }
  0xf4   : > { %1305 = vmatpush1.msra.mxu0 %v1240_v39  ;;  %1377 = vmatprep.subr.mxu1 %v1173_v40  ;;  %v1205_v39 = vld [vmem:[#allocation9 + $0x188] sm:$0xff]  ;;  %v1272_v40 = vld [vmem:[#allocation10 + $0x190] sm:$0xff] }
  0xf5   : > { %1306 = vmatprep.subr.mxu0 %v1239_v41  ;;  %1378 = vmatpush1.msra.mxu1 %v1172_v42  ;;  %v1204_v41 = vld [vmem:[#allocation9 + $0x180] sm:$0xff]  ;;  %v1271_v42 = vld [vmem:[#allocation10 + $0x188] sm:$0xff] }
  0xf6   : > { %1307 = vmatpush1.msra.mxu0 %v1238_v43  ;;  %1379 = vmatprep.subr.mxu1 %v1171_v44  ;;  %v1203_v43 = vld [vmem:[#allocation9 + $0x178] sm:$0xff]  ;;  %v1270_v44 = vld [vmem:[#allocation10 + $0x180] sm:$0xff] }
  0xf7   : > { %1308 = vmatprep.subr.mxu0 %v1237_v45  ;;  %1380 = vmatpush1.msra.mxu1 %v1170_v46  ;;  %v1202_v45 = vld [vmem:[#allocation9 + $0x170] sm:$0xff]  ;;  %v1269_v46 = vld [vmem:[#allocation10 + $0x178] sm:$0xff] }
  0xf8   : > { %1309 = vmatpush1.msra.mxu0 %v1236_v47  ;;  %1381 = vmatprep.subr.mxu1 %v1169_v48  ;;  %v1201_v47 = vld [vmem:[#allocation9 + $0x168] sm:$0xff]  ;;  %v1268_v48 = vld [vmem:[#allocation10 + $0x170] sm:$0xff] }
  0xf9   : > { %1310 = vmatprep.subr.mxu0 %v1235_v49  ;;  %1382 = vmatpush1.msra.mxu1 %v1168_v50  ;;  %v1200_v49 = vld [vmem:[#allocation9 + $0x160] sm:$0xff]  ;;  %v1267_v50 = vld [vmem:[#allocation10 + $0x168] sm:$0xff] }
  0xfa   : > { %1311 = vmatpush1.msra.mxu0 %v1234_v51  ;;  %1383 = vmatprep.subr.mxu1 %v1167_v52  ;;  %v1199_v51 = vld [vmem:[#allocation9 + $0x158] sm:$0xff]  ;;  %v1266_v52 = vld [vmem:[#allocation10 + $0x160] sm:$0xff] }
  0xfb   : > { %1312 = vmatprep.subr.mxu0 %v1233_v53  ;;  %1384 = vmatpush1.msra.mxu1 %v1166_v54  ;;  %v1198_v53 = vld [vmem:[#allocation9 + $0x150] sm:$0xff]  ;;  %v1265_v54 = vld [vmem:[#allocation10 + $0x158] sm:$0xff] }
  0xfc   : > { %1313 = vmatpush1.msra.mxu0 %v1232_v55  ;;  %1385 = vmatprep.subr.mxu1 %v1165_v56  ;;  %v1197_v55 = vld [vmem:[#allocation9 + $0x148] sm:$0xff]  ;;  %v1264_v56 = vld [vmem:[#allocation10 + $0x150] sm:$0xff] }
  0xfd   : > { %1314 = vmatprep.subr.mxu0 %v1231_v57  ;;  %1386 = vmatpush1.msra.mxu1 %v1164_v58  ;;  %v1196_v57 = vld [vmem:[#allocation9 + $0x140] sm:$0xff]  ;;  %v1263_v58 = vld [vmem:[#allocation10 + $0x148] sm:$0xff] }
  0xfe   : > { %1315 = vmatpush1.msra.mxu0 %v1230_v59  ;;  %1387 = vmatprep.subr.mxu1 %v1163_v60  ;;  %v1195_v59 = vld [vmem:[#allocation9 + $0x138] sm:$0xff]  ;;  %v1262_v60 = vld [vmem:[#allocation10 + $0x140] sm:$0xff] }
  0xff   : > { %1316 = vmatprep.subr.mxu0 %v1229_v61  ;;  %1388 = vmatpush1.msra.mxu1 %v1162_v62  ;;  %v1194_v61 = vld [vmem:[#allocation9 + $0x130] sm:$0xff]  ;;  %v1261_v62 = vld [vmem:[#allocation10 + $0x138] sm:$0xff] }
 0x100   : > { %1317 = vmatpush1.msra.mxu0 %v1228_v63  ;;  %1389 = vmatprep.subr.mxu1 %v1161_v0  ;;  %v1193_v63 = vld [vmem:[#allocation9 + $0x128] sm:$0xff]  ;;  %v1260_v0 = vld [vmem:[#allocation10 + $0x130] sm:$0xff] }
 0x101   : > { %1318 = vmatprep.subr.mxu0 %v1227_v1  ;;  %1390 = vmatpush1.msra.mxu1 %v1160_v2  ;;  %v1192_v1 = vld [vmem:[#allocation9 + $0x120] sm:$0xff]  ;;  %v1259_v2 = vld [vmem:[#allocation10 + $0x128] sm:$0xff] }
 0x102   : > { %1319 = vmatpush1.msra.mxu0 %v1226_v3  ;;  %1391 = vmatprep.subr.mxu1 %v1159_v4  ;;  %v1191_v3 = vld [vmem:[#allocation9 + $0x118] sm:$0xff]  ;;  %v1258_v4 = vld [vmem:[#allocation10 + $0x120] sm:$0xff] }
 0x103   : > { %1320 = vmatprep.subr.mxu0 %v1225_v5  ;;  %1392 = vmatpush1.msra.mxu1 %v1158_v6  ;;  %v1190_v5 = vld [vmem:[#allocation9 + $0x110] sm:$0xff]  ;;  %v1257_v6 = vld [vmem:[#allocation10 + $0x118] sm:$0xff] }
 0x104   : > { %1321 = vmatpush1.msra.mxu0 %v1224_v7  ;;  %1393 = vmatprep.subr.mxu1 %v1157_v8  ;;  %v1189_v7 = vld [vmem:[#allocation9 + $0x108] sm:$0xff]  ;;  %v1256_v8 = vld [vmem:[#allocation10 + $0x110] sm:$0xff] }
 0x105   : > { %1322 = vmatprep.subr.mxu0 %v1223_v9  ;;  %1394 = vmatpush1.msra.mxu1 %v1156_v10  ;;  %v1188_v9 = vld [vmem:[#allocation9 + $0x100] sm:$0xff]  ;;  %v1255_v10 = vld [vmem:[#allocation10 + $0x108] sm:$0xff] }
 0x106   : > { %1323 = vmatpush1.msra.mxu0 %v1222_v11  ;;  %1395 = vmatprep.subr.mxu1 %v1219_v12  ;;  %v1254_v11 = vld [vmem:[#allocation10 + $0x100] sm:$0xff]  ;;  %v1485_v12 = vld [vmem:[%s2939_s7 + $0xf8] sm:$0xff] }
 0x107   : > { %1324 = vmatprep.subr.mxu0 %v1285_v13  ;;  %1396 = vmatpush2.msra.mxu1 %v1218_v14  ;;  %v1519_v13 = vld [vmem:[#allocation12 + $0xf8] sm:$0xff]  ;;  %v1138_v14 = vlaneseq }
 0x108   : > { %1325 = vmatpush2.msra.mxu0 %v1284_v15  ;;  %1397 = vmatprep.subr.mxu1 %v1217_v16 }
 0x109   : > { %1326 = vmatprep.subr.mxu0 %v1283_v17  ;;  %1398 = vmatpush2.msra.mxu1 %v1216_v18  ;;  %v2716_v15 = vshrl.u32 %v1138_v14, 7 }
 0x10a   : > { %1327 = vmatpush2.msra.mxu0 %v1282_v19  ;;  %1399 = vmatprep.subr.mxu1 %v1215_v20 }
 0x10b   : > { %1328 = vmatprep.subr.mxu0 %v1281_v21  ;;  %1400 = vmatpush2.msra.mxu1 %v1214_v22  ;;  %v1140_v18 = vsub.s32 0, %v2716_v15  ;;  %v1136_v21 = vld [vmem:[%s2935_s3] sm:$0x3] }
 0x10c   : > { %1329 = vmatpush2.msra.mxu0 %v1280_v23  ;;  %1401 = vmatprep.subr.mxu1 %v1213_v24  ;;  %v1144_v23 = vsub.s32 1, %v2716_v15  ;;  %v2481_v15 = vmov 0.0  }
 0x10d   : > { %1330 = vmatprep.subr.mxu0 %v1279_v25  ;;  %1402 = vmatpush2.msra.mxu1 %v1212_v26 }
 0x10e   : > { %1331 = vmatpush2.msra.mxu0 %v1278_v27  ;;  %1403 = vmatprep.subr.mxu1 %v1211_v28  ;;  %v1141_v28 = vrot.slane %v1136_v21, %v1140_v18 }
 0x10f   : > { %1332 = vmatprep.subr.mxu0 %v1277_v29  ;;  %1404 = vmatpush2.msra.mxu1 %v1210_v30 }
 0x110   : > { %1333 = vmatpush2.msra.mxu0 %v1276_v31  ;;  %1405 = vmatprep.subr.mxu1 %v1209_v32  ;;  %v1145_v32 = vrot.slane %v1136_v21, %v1144_v23  ;;  %v1475_v21 = vld [vmem:[%s2939_s7 + $0xa8] sm:$0xff] }
 0x111   : > { %1406 = vmatpush2.msra.mxu1 %v1208_v33  ;;  %1334 = vmatprep.subr.mxu0 %v1275_v34 }
 0x112   : > { %1407 = vmatprep.subr.mxu1 %v1207_v35  ;;  %1335 = vmatpush2.msra.mxu0 %v1274_v36 }
 0x113   : > { %1408 = vmatpush2.msra.mxu1 %v1206_v37  ;;  %1336 = vmatprep.subr.mxu0 %v1273_v38 }
 0x114   : > { %1409 = vmatprep.subr.mxu1 %v1205_v39  ;;  %1337 = vmatpush2.msra.mxu0 %v1272_v40 }
 0x115   : > { %1410 = vmatpush2.msra.mxu1 %v1204_v41  ;;  %1338 = vmatprep.subr.mxu0 %v1271_v42  ;;  %v1469_v42 = vld [vmem:[%s2939_s7 + $0x78] sm:$0xff] }
 0x116   : > { %1411 = vmatprep.subr.mxu1 %v1203_v43  ;;  %1339 = vmatpush2.msra.mxu0 %v1270_v44 }
 0x117   : > { %1412 = vmatpush2.msra.mxu1 %v1202_v45  ;;  %1340 = vmatprep.subr.mxu0 %v1269_v46  ;;  %v1484_v45 = vld [vmem:[%s2939_s7 + $0xf0] sm:$0xff] }
 0x118   : > { %1413 = vmatprep.subr.mxu1 %v1201_v47  ;;  %1341 = vmatpush2.msra.mxu0 %v1268_v48  ;;  %v1503_v47 = vld [vmem:[#allocation12 + $0x78] sm:$0xff]  ;;  %v1468_v48 = vld [vmem:[%s2939_s7 + $0x70] sm:$0xff] }
 0x119   : > { %1414 = vmatpush2.msra.mxu1 %v1200_v49  ;;  %1342 = vmatprep.subr.mxu0 %v1267_v50  ;;  %v1518_v49 = vld [vmem:[#allocation12 + $0xf0] sm:$0xff]  ;;  %v1483_v50 = vld [vmem:[%s2939_s7 + $0xe8] sm:$0xff] }
 0x11a   : > { %1415 = vmatprep.subr.mxu1 %v1199_v51  ;;  %1343 = vmatpush2.msra.mxu0 %v1266_v52  ;;  %v1502_v51 = vld [vmem:[#allocation12 + $0x70] sm:$0xff]  ;;  %v1467_v52 = vld [vmem:[%s2939_s7 + $0x68] sm:$0xff] }
 0x11b   : > { %1416 = vmatpush2.msra.mxu1 %v1198_v53  ;;  %1344 = vmatprep.subr.mxu0 %v1265_v54  ;;  %v1517_v53 = vld [vmem:[#allocation12 + $0xe8] sm:$0xff]  ;;  %v1482_v54 = vld [vmem:[%s2939_s7 + $0xe0] sm:$0xff] }
 0x11c   : > { %1417 = vmatprep.subr.mxu1 %v1197_v55  ;;  %1345 = vmatpush2.msra.mxu0 %v1264_v56  ;;  %v1501_v55 = vld [vmem:[#allocation12 + $0x68] sm:$0xff]  ;;  %v1466_v56 = vld [vmem:[%s2939_s7 + $0x60] sm:$0xff] }
 0x11d   : > { %1418 = vmatpush2.msra.mxu1 %v1196_v57  ;;  %1346 = vmatprep.subr.mxu0 %v1263_v58  ;;  %v1516_v57 = vld [vmem:[#allocation12 + $0xe0] sm:$0xff]  ;;  %v1481_v58 = vld [vmem:[%s2939_s7 + $0xd8] sm:$0xff] }
 0x11e   : > { %1419 = vmatprep.subr.mxu1 %v1195_v59  ;;  %1347 = vmatpush2.msra.mxu0 %v1262_v60  ;;  %v1500_v59 = vld [vmem:[#allocation12 + $0x60] sm:$0xff]  ;;  %v1465_v60 = vld [vmem:[%s2939_s7 + $0x58] sm:$0xff] }
 0x11f   : > { %1420 = vmatpush2.msra.mxu1 %v1194_v61  ;;  %1348 = vmatprep.subr.mxu0 %v1261_v62  ;;  %v1515_v61 = vld [vmem:[#allocation12 + $0xd8] sm:$0xff]  ;;  %v1480_v62 = vld [vmem:[%s2939_s7 + $0xd0] sm:$0xff] }
 0x120   : > { %1421 = vmatprep.subr.mxu1 %v1193_v63  ;;  %1349 = vmatpush2.msra.mxu0 %v1260_v0  ;;  %v1499_v63 = vld [vmem:[#allocation12 + $0x58] sm:$0xff]  ;;  %v1464_v0 = vld [vmem:[%s2939_s7 + $0x50] sm:$0xff] }
 0x121   : > { %1422 = vmatpush2.msra.mxu1 %v1192_v1  ;;  %1350 = vmatprep.subr.mxu0 %v1259_v2  ;;  %v1514_v1 = vld [vmem:[#allocation12 + $0xd0] sm:$0xff]  ;;  %v1479_v2 = vld [vmem:[%s2939_s7 + $0xc8] sm:$0xff] }
 0x122   : > { %1423 = vmatprep.subr.mxu1 %v1191_v3  ;;  %1351 = vmatpush2.msra.mxu0 %v1258_v4  ;;  %v1498_v3 = vld [vmem:[#allocation12 + $0x50] sm:$0xff]  ;;  %v1463_v4 = vld [vmem:[%s2939_s7 + $0x48] sm:$0xff] }
 0x123   : > { %1424 = vmatpush2.msra.mxu1 %v1190_v5  ;;  %1352 = vmatprep.subr.mxu0 %v1257_v6  ;;  %v1513_v5 = vld [vmem:[#allocation12 + $0xc8] sm:$0xff]  ;;  %v1478_v6 = vld [vmem:[%s2939_s7 + $0xc0] sm:$0xff] }
 0x124   : > { %1425 = vmatprep.subr.mxu1 %v1189_v7  ;;  %1353 = vmatpush2.msra.mxu0 %v1256_v8  ;;  %v1497_v7 = vld [vmem:[#allocation12 + $0x48] sm:$0xff]  ;;  %v1462_v8 = vld [vmem:[%s2939_s7 + $0x40] sm:$0xff] }
 0x125   : > { %1426 = vmatpush2.msra.mxu1 %v1188_v9  ;;  %1354 = vmatprep.subr.mxu0 %v1255_v10  ;;  %v1512_v9 = vld [vmem:[#allocation12 + $0xc0] sm:$0xff]  ;;  %v1477_v10 = vld [vmem:[%s2939_s7 + $0xb8] sm:$0xff] }
 0x126   : > { %1355 = vmatpush2.msra.mxu0 %v1254_v11  ;;  %2074 = vmatprep.subr.mxu1 %v1485_v12  ;;  %v1496_v11 = vld [vmem:[#allocation12 + $0x40] sm:$0xff]  ;;  %v1461_v12 = vld [vmem:[%s2939_s7 + $0x38] sm:$0xff] }
 0x127   : > { %2039 = vmatprep.subr.mxu0 %v1519_v13  ;;  %v1511_v13 = vld [vmem:[#allocation12 + $0xb8] sm:$0xff] }
 0x163   : > { %v918_v16 = vpop.f32.mrf.mxu0 }
 0x164   : > { %v989_v17 = vpop.f32.mrf.mxu1 }
 0x165   : > { %v920_v19 = vpop.f32.mrf.mxu0  ;;  %v990_v22 = vadd.f32 %v989_v17, %v918_v16  ;;  %v1476_v16 = vld [vmem:[%s2939_s7 + $0xb0] sm:$0xff]  ;;  %v1495_v17 = vld [vmem:[#allocation12 + $0x38] sm:$0xff] }
 0x166   : > { %v991_v20 = vpop.f32.mrf.mxu1 }
 0x167   : > { %v992_v26 = vadd.f32 %v991_v20, %v920_v19  ;;  %v1460_v19 = vld [vmem:[%s2939_s7 + $0x30] sm:$0xff] }
 0x168   : > { %v1510_v20 = vld [vmem:[#allocation12 + $0xb0] sm:$0xff] }
 0x1a5   : > { %v1060_v24 = vpop.f32.mrf.mxu0 }
 0x1a6   : > { %v1131_v25 = vpop.f32.mrf.mxu1  ;;  %v1061_v27 = vadd.f32 %v1060_v24, %v990_v22  ;;  %v1494_v22 = vld [vmem:[#allocation12 + $0x30] sm:$0xff]  ;;  %v1459_v24 = vld [vmem:[%s2939_s7 + $0x28] sm:$0xff] }
 0x1a7   : > { %v1062_v29 = vpop.f32.mrf.mxu0 }
 0x1a8   : > { %v1132_v30 = vadd.f32 %v1131_v25, %v1061_v27  ;;  %v1063_v31 = vadd.f32 %v1062_v29, %v992_v26  ;;  %v1133_v33 = vpop.f32.mrf.mxu1  ;;  %v1509_v25 = vld [vmem:[#allocation12 + $0xa8] sm:$0xff]  ;;  %v1474_v26 = vld [vmem:[%s2939_s7 + $0xa0] sm:$0xff] }
 0x1a9   : > { %v1493_v27 = vld [vmem:[#allocation12 + $0x28] sm:$0xff]  ;;  %v1508_v29 = vld [vmem:[#allocation12 + $0xa0] sm:$0xff] }
 0x1aa   : > { %v1148_v34 = vadd.f32 %v1141_v28, %v1132_v30  ;;  %v1134_v35 = vadd.f32 %v1133_v33, %v1063_v31  ;;  %v1458_v28 = vld [vmem:[%s2939_s7 + $0x20] sm:$0xff]  ;;  %v1473_v30 = vld [vmem:[%s2939_s7 + $0x98] sm:$0xff] }
 0x1ab   : > { %v1492_v31 = vld [vmem:[#allocation12 + $0x20] sm:$0xff]  ;;  %v1507_v33 = vld [vmem:[#allocation12 + $0x98] sm:$0xff] }
 0x1ac   : > { %v1150_v36 = vmax.f32 %v1148_v34, 0.0  ;;  %v1149_v37 = vadd.f32 %v1145_v32, %v1134_v35  ;;  %v1457_v32 = vld [vmem:[%s2939_s7 + $0x18] sm:$0xff]  ;;  %v1472_v34 = vld [vmem:[%s2939_s7 + $0x90] sm:$0xff] }
 0x1ad   : > { %v1491_v35 = vld [vmem:[#allocation12 + $0x18] sm:$0xff] }
 0x1ae   : > { %1152 = vst [vmem:[#allocation2] sm:$0xf] %v1150_v36  ;;  %v1151_v38 = vmax.f32 %v1149_v37, 0.0  ;;  %v1456_v36 = vld [vmem:[%s2939_s7 + $0x10] sm:$0xff] }
 0x1af   : > { %v1506_v37 = vld [vmem:[#allocation12 + $0x90] sm:$0xff] }
 0x1b0   : > { %1153 = vst [vmem:[#allocation2 + $0x8] sm:$0xf] %v1151_v38  ;;  %v1471_v38 = vld [vmem:[%s2939_s7 + $0x88] sm:$0xff] }
 0x1b5   : > { %v1220_v39 = vld [vmem:[#allocation2] sm:$0xe] }
 0x1b6   : > { %v1154_v43 = vld [vmem:[#allocation2] sm:$0x7]  ;;  %v1288_v46 = vrot.slane %v1220_v39, 1  ;;  %v1490_v39 = vld [vmem:[#allocation12 + $0x10] sm:$0xff] }
 0x1b7   : > { %v1155_v40 = vld [vmem:[#allocation2 + $0x8] sm:$0x7] }
 0x1b8   : > { %v1221_v41 = vld [vmem:[#allocation2 + $0x8] sm:$0xe]  ;;  %1427 = vmatprep.mubr.f32.mxu1 %v1155_v40 }
 0x1b9   : > { %v1289_v44 = vrot.slane %v1221_v41, 1  ;;  %1428 = vmatmul.mubr.f32.vlgmr.msra.gmra.mxu1 %v1154_v43  ;;  %v1455_v40 = vld [vmem:[%s2939_s7 + $0x8] sm:$0xff] }
 0x1ba   : > { %2075 = vmatpush3.msra.mxu1 %v1469_v42  ;;  %v1505_v41 = vld [vmem:[#allocation12 + $0x88] sm:$0xff]  ;;  %v1470_v42 = vld [vmem:[%s2939_s7 + $0x80] sm:$0xff] }
 0x1bb   : > { %1356 = vmatprep.mubr.f32.mxu0 %v1289_v44  ;;  %2076 = vmatprep.subr.mxu1 %v1484_v45  ;;  %v1489_v43 = vld [vmem:[#allocation12 + $0x8] sm:$0xff]  ;;  %v1454_v44 = vld [vmem:[%s2939_s7] sm:$0xff] }
 0x1bc   : > { %1357 = vmatmul.mubr.f32.vlgmr.msra.gmra.mxu0 %v1288_v46  ;;  %2077 = vmatpush3.msra.mxu1 %v1468_v48  ;;  %v1504_v45 = vld [vmem:[#allocation12 + $0x80] sm:$0xff] }
 0x1bd   : > { %2040 = vmatpush3.msra.mxu0 %v1503_v47  ;;  %2078 = vmatprep.subr.mxu1 %v1483_v50  ;;  %v1488_v46 = vld [vmem:[#allocation12] sm:$0xff] }
 0x1be   : > { %2041 = vmatprep.subr.mxu0 %v1518_v49  ;;  %2079 = vmatpush3.msra.mxu1 %v1467_v52  ;;  %v1434_v47 = vld [vmem:[%s2938_s6] sm:$0x3] }
 0x1bf   : > { %2042 = vmatpush3.msra.mxu0 %v1502_v51  ;;  %2080 = vmatprep.subr.mxu1 %v1482_v54  ;;  %v1439_v49 = vrot.slane %v1434_v47, %v1140_v18  ;;  %v1443_v52 = vrot.slane %v1434_v47, %v1144_v23  ;;  %v1772_v23 = vld [vmem:[%s2944_s12 + $0x78] sm:$0xff] }
 0x1c0   : > { %2043 = vmatprep.subr.mxu0 %v1517_v53  ;;  %2081 = vmatpush3.msra.mxu1 %v1466_v56 }
 0x1c1   : > { %2044 = vmatpush3.msra.mxu0 %v1501_v55  ;;  %2082 = vmatprep.subr.mxu1 %v1481_v58 }
 0x1c2   : > { %2045 = vmatprep.subr.mxu0 %v1516_v57  ;;  %2083 = vmatpush3.msra.mxu1 %v1465_v60 }
 0x1c3   : > { %2046 = vmatpush3.msra.mxu0 %v1500_v59  ;;  %2084 = vmatprep.subr.mxu1 %v1480_v62 }
 0x1c4   : > { %2047 = vmatprep.subr.mxu0 %v1515_v61  ;;  %2085 = vmatpush3.msra.mxu1 %v1464_v0 }
 0x1c5   : > { %2048 = vmatpush3.msra.mxu0 %v1499_v63  ;;  %2086 = vmatprep.subr.mxu1 %v1479_v2  ;;  %v1770_v2 = vld [vmem:[%s2944_s12 + $0x68] sm:$0xff] }
 0x1c6   : > { %2049 = vmatprep.subr.mxu0 %v1514_v1  ;;  %2087 = vmatpush3.msra.mxu1 %v1463_v4  ;;  %v1771_v1 = vld [vmem:[%s2944_s12 + $0x70] sm:$0xff]  ;;  %v1768_v4 = vld [vmem:[%s2944_s12 + $0x58] sm:$0xff] }
 0x1c7   : > { %2050 = vmatpush3.msra.mxu0 %v1498_v3  ;;  %2088 = vmatprep.subr.mxu1 %v1478_v6  ;;  %v1769_v3 = vld [vmem:[%s2944_s12 + $0x60] sm:$0xff]  ;;  %v1766_v6 = vld [vmem:[%s2944_s12 + $0x48] sm:$0xff] }
 0x1c8   : > { %2051 = vmatprep.subr.mxu0 %v1513_v5  ;;  %2089 = vmatpush3.msra.mxu1 %v1462_v8  ;;  %v1767_v5 = vld [vmem:[%s2944_s12 + $0x50] sm:$0xff]  ;;  %v1764_v8 = vld [vmem:[%s2944_s12 + $0x38] sm:$0xff] }
 0x1c9   : > { %2052 = vmatpush3.msra.mxu0 %v1497_v7  ;;  %2090 = vmatprep.subr.mxu1 %v1477_v10  ;;  %v1765_v7 = vld [vmem:[%s2944_s12 + $0x40] sm:$0xff]  ;;  %v1762_v10 = vld [vmem:[%s2944_s12 + $0x28] sm:$0xff] }
 0x1ca   : > { %2053 = vmatprep.subr.mxu0 %v1512_v9  ;;  %2091 = vmatpush3.msra.mxu1 %v1461_v12  ;;  %v1763_v9 = vld [vmem:[%s2944_s12 + $0x30] sm:$0xff]  ;;  %v1760_v12 = vld [vmem:[%s2944_s12 + $0x18] sm:$0xff] }
 0x1cb   : > { %2054 = vmatpush3.msra.mxu0 %v1496_v11  ;;  %2092 = vmatprep.subr.mxu1 %v1476_v16  ;;  %v1761_v11 = vld [vmem:[%s2944_s12 + $0x20] sm:$0xff]  ;;  %v1758_v16 = vld [vmem:[%s2944_s12 + $0x8] sm:$0xff] }
 0x1cc   : > { %2055 = vmatprep.subr.mxu0 %v1511_v13  ;;  %2093 = vmatpush3.msra.mxu1 %v1460_v19  ;;  %v1759_v13 = vld [vmem:[%s2944_s12 + $0x10] sm:$0xff] }
 0x1cd   : > { %2056 = vmatpush3.msra.mxu0 %v1495_v17  ;;  %2094 = vmatprep.subr.mxu1 %v1475_v21 }
 0x1ce   : > { %2057 = vmatprep.subr.mxu0 %v1510_v20  ;;  %2095 = vmatpush3.msra.mxu1 %v1459_v24 }
 0x1cf   : > { %2058 = vmatpush3.msra.mxu0 %v1494_v22  ;;  %2096 = vmatprep.subr.mxu1 %v1474_v26 }
 0x1d0   : > { %2059 = vmatprep.subr.mxu0 %v1509_v25  ;;  %2097 = vmatpush3.msra.mxu1 %v1458_v28  ;;  %v2032_v25 = vld [vmem:[%s2941_s9] ss:$0 sm:$0xff] }
 0x1d1   : > { %2060 = vmatpush3.msra.mxu0 %v1493_v27  ;;  %2098 = vmatprep.subr.mxu1 %v1473_v30  ;;  %v1676_v28 = vld [vmem:[%s2942_s10] sm:$0x3] }
 0x1d2   : > { %2061 = vmatprep.subr.mxu0 %v1508_v29  ;;  %2099 = vmatpush3.msra.mxu1 %v1457_v32  ;;  %v1757_v32 = vld [vmem:[%s2944_s12] sm:$0xff] }
 0x1d3   : > { %2062 = vmatpush3.msra.mxu0 %v1492_v31  ;;  %2100 = vmatprep.subr.mxu1 %v1472_v34  ;;  %v1678_v31 = vld [vmem:[%s2943_s11] sm:$0x1] }
 0x1d4   : > { %2063 = vmatprep.subr.mxu0 %v1507_v33  ;;  %2101 = vmatpush3.msra.mxu1 %v1456_v36 }
 0x1d5   : > { %2064 = vmatpush3.msra.mxu0 %v1491_v35  ;;  %2102 = vmatprep.subr.mxu1 %v1471_v38  ;;  %v1773_v35 = vld [vmem:[%s2945_s13] sm:$0x1] }
 0x1d6   : > { %2065 = vmatprep.subr.mxu0 %v1506_v37  ;;  %2103 = vmatpush3.msra.mxu1 %v1455_v40 }
 0x1d7   : > { %2066 = vmatpush3.msra.mxu0 %v1490_v39  ;;  %2104 = vmatprep.subr.mxu1 %v1470_v42 }
 0x1d8   : > { %2067 = vmatprep.subr.mxu0 %v1505_v41  ;;  %2105 = vmatpush3.msra.mxu1 %v1454_v44 }
 0x1d9   : > { %2068 = vmatpush3.msra.mxu0 %v1489_v43  ;;  %2133 = vmatprep.subr.mxu1 %v2481_v15 }
 0x1da   : > { %2069 = vmatprep.subr.mxu0 %v1504_v45 }
 0x1db   : > { %2070 = vmatpush3.msra.mxu0 %v1488_v46 }
 0x1dc   : > { %2128 = vmatprep.subr.mxu0 %v2481_v15 }
 0x279   : > { %v1429_v48 = vpop.f32.mrf.mxu1 }
 0x27b   : > { %v1431_v53 = vpop.f32.mrf.mxu1 }
 0x27c   : > { %v1358_v50 = vpop.f32.mrf.mxu0 }
 0x27d   : > { %v1430_v51 = vadd.f32 %v1429_v48, %v1358_v50  ;;  %v1845_v48 = vand.u32 127, %v1138_v14 }
 0x27e   : > { %v1360_v54 = vpop.f32.mrf.mxu0 }
 0x27f   : > { %v1446_v55 = vadd.f32 %v1439_v49, %v1430_v51  ;;  %v1432_v56 = vadd.f32 %v1431_v53, %v1360_v54  ;;  %vm1846_vm4 = vcmp.lt.s32.totalorder %v1845_v48, 16 }
 0x281   : > { %v1448_v57 = vmax.f32 %v1446_v55, 0.0  ;;  %v1447_v58 = vadd.f32 %v1443_v52, %v1432_v56 }
 0x283   : > { %1450 = vst [vmem:[#allocation3 + $0x8] sm:$0x7] %v1448_v57  ;;  %v1449_v59 = vmax.f32 %v1447_v58, 0.0 }
 0x285   : > { %1451 = vst [vmem:[#allocation3] sm:$0x7] %v1449_v59 }
 0x28a   : > { %v1486_v60 = vld [vmem:[#allocation3 + $0x8] sm:$0x6] }
 0x28b   : > { %v1452_v63 = vld [vmem:[#allocation3 + $0x8] sm:$0x3]  ;;  %v1522_v0 = vrot.slane %v1486_v60, 1 }
 0x28c   : > { %v1453_v61 = vld [vmem:[#allocation3] sm:$0x3] }
 0x28d   : > { %v1487_v62 = vld [vmem:[#allocation3] sm:$0x6]  ;;  %1660 = vmatprep.mubr.f32.mxu1 %v1453_v61 }
 0x28e   : > { %v1523_v18 = vrot.slane %v1487_v62, 1  ;;  %1661 = vmatmul.mubr.f32.vlgmr.msra.gmra.mxu1 %v1452_v63 }
 0x28f   : > { %2165 = vmatprep.mubr.msk.f32.mxu1 %vm2482_vm0, %v2481_v15  ;;  %2134 = vmatpush3.msra.mxu1 %v1772_v23 }
 0x290   : > { %1590 = vmatprep.mubr.f32.mxu0 %v1523_v18  ;;  %2135 = vmatprep.subr.mxu1 %v2481_v15 }
 0x291   : > { %1591 = vmatmul.mubr.f32.vlgmr.msra.gmra.mxu0 %v1522_v0  ;;  %2136 = vmatpush3.msra.mxu1 %v1771_v1 }
 0x292   : > { %2130 = vmatprep.mubr.msk.f32.mxu0 %vm2482_vm0, %v2481_v15  ;;  %2137 = vmatprep.subr.mxu1 %v2481_v15 }
 0x293   : > { %2138 = vmatpush3.msra.mxu1 %v1770_v2 }
 0x294   : > { %2139 = vmatprep.subr.mxu1 %v2481_v15 }
 0x295   : > { %2140 = vmatpush3.msra.mxu1 %v1769_v3 }
 0x296   : > { %2141 = vmatprep.subr.mxu1 %v2481_v15 }
 0x297   : > { %2142 = vmatpush3.msra.mxu1 %v1768_v4 }
 0x298   : > { %2143 = vmatprep.subr.mxu1 %v2481_v15 }
 0x299   : > { %2144 = vmatpush3.msra.mxu1 %v1767_v5 }
 0x29a   : > { %2145 = vmatprep.subr.mxu1 %v2481_v15 }
 0x29b   : > { %2146 = vmatpush3.msra.mxu1 %v1766_v6 }
 0x29c   : > { %2147 = vmatprep.subr.mxu1 %v2481_v15 }
 0x29d   : > { %2148 = vmatpush3.msra.mxu1 %v1765_v7 }
 0x29e   : > { %2149 = vmatprep.subr.mxu1 %v2481_v15 }
 0x29f   : > { %2150 = vmatpush3.msra.mxu1 %v1764_v8 }
 0x2a0   : > { %2151 = vmatprep.subr.mxu1 %v2481_v15 }
 0x2a1   : > { %2152 = vmatpush3.msra.mxu1 %v1763_v9 }
 0x2a2   : > { %2153 = vmatprep.subr.mxu1 %v2481_v15 }
 0x2a3   : > { %2154 = vmatpush3.msra.mxu1 %v1762_v10 }
 0x2a4   : > { %2155 = vmatprep.subr.mxu1 %v2481_v15 }
 0x2a5   : > { %2156 = vmatpush3.msra.mxu1 %v1761_v11 }
 0x2a6   : > { %2157 = vmatprep.subr.mxu1 %v2481_v15 }
 0x2a7   : > { %2158 = vmatpush3.msra.mxu1 %v1760_v12 }
 0x2a8   : > { %2159 = vmatprep.subr.mxu1 %v2481_v15 }
 0x2a9   : > { %2160 = vmatpush3.msra.mxu1 %v1759_v13 }
 0x2aa   : > { %2161 = vmatprep.subr.mxu1 %v2481_v15 }
 0x2ab   : > { %2162 = vmatpush3.msra.mxu1 %v1758_v16 }
 0x2ac   : > { %2163 = vmatprep.subr.mxu1 %v2481_v15 }
 0x2ad   : > { %2164 = vmatpush3.msra.mxu1 %v1757_v32 }
 0x34e   : > { %v2106_v17 = vpop.f32.mrf.mxu1 }
 0x350   : > { %v2107_v20 = vpop.f32.mrf.mxu1 }
 0x351   : > { %v2071_v19 = vpop.f32.mrf.mxu0  ;;  %v2108_v22 = vadd.f32 %v2107_v20, %v2106_v17 }
 0x353   : > { %v2072_v21 = vpop.f32.mrf.mxu0 }
 0x354   : > { %v2073_v24 = vadd.f32 %v2072_v21, %v2071_v19 }
 0x356   : > { %v1663_v26 = vadd.f32 %v2108_v22, %v2073_v24 }
 0x358   : > { %v1673_v27 = vadd.f32 %v2032_v25, %v1663_v26 }
 0x35a   : > { %v1674_v29 = vmax.f32 %v1673_v27, 0.0 }
 0x35c   : > { %1675 = vst [vmem:[%s575_s27] sm:$0x3] %v1674_v29  ;;  %v1677_v30 = vmul.f32 %v1676_v28, %v1674_v29 }
 0x35e   : > { %2129 = vmatpush3.msk.msra.mxu0 %vm1683_vm1, %v1677_v30 }
 0x35f   : > { %2131 = vmatmul.mubr.msk.f32.vlgmr.msra.gmra.mxu0 %vm1679_vm2, %v1678_v31 }
 0x41f   : > { %v1753_v33 = vpop.f32.mrf.mxu0 }
 0x420   : > { %2166 = vmatmul.mubr.f32.vlgmr.msra.gmra.mxu1 %v1753_v33 }
 0x421   : > { %v2132_v34 = vpop.f32.mrf.mxu0 }
 0x4e0   : > { %v1840_v36 = vpop.f32.mrf.mxu1 }
 0x4e1   : > { %v1841_v37 = vadd.f32 %v1840_v36, %v1773_v35 }
 0x4e2   : > { %v2167_v38 = vpop.f32.mrf.mxu1 }
 0x4e3   : > { %v1848_v39 = vand.u32 2147483647, %v1841_v37  ;;  %v1847_v51 = vmax.f32 %v1841_v37, 0.0 }
 0x4e5   : > { %v1849_v40 = vsub.f32 0.0, %v1848_v39 }
 0x4e7   : > { %v1850_v41 = vmul.f32 1.442695, %v1849_v40 }
 0x4e9   : > { %2264 = vpow2.f32 %v1850_v41 }
 0x4f6   : > { %v2265_v42 = vpop.eup %2264 }
 0x4f7   : > { %v1852_v43 = vadd.f32 1.0, %v2265_v42  ;;  %v1855_v44 = vmul.f32 -0.5, %v2265_v42  ;;  %v1858_v46 = vand.u32 2147483647, %v2265_v42 }
 0x4f9   : > { %2266 = vlog2.f32 %v1852_v43  ;;  %v1856_v45 = vadd.f32 1.0, %v1855_v44  ;;  %vm1859_vm3 = vcmp.lt.f32.partialorder %v1858_v46, 0.0004427343 }
 0x4fb   : > { %v1857_v50 = vmul.f32 %v2265_v42, %v1856_v45 }
 0x506   : > { %v2267_v47 = vpop.eup %2266 }
 0x507   : > { %v1854_v49 = vmul.f32 0.6931472, %v2267_v47 }
 0x509   : > { %v1860_v52 = vsel %vm1859_vm3, %v1857_v50, %v1854_v49 }
 0x50a   : > { %v1861_v53 = vadd.f32 %v1860_v52, %v1847_v51 }
 0x50c   : > { %v1862_v54 = vadd.f32 1e-06, %v1861_v53 }
 0x50e   : > { %v1863_v14 = vsel %vm1846_vm4, %v1841_v37, %v1862_v54 }
 0x50f   : > { %1865 = vst.msk [vmem:[%s566_s30] sm:$0x1] %vm1864_vm5, %v1863_v14 }
 0x510   : > { %2411 = shalt.err (!%p2408_p13)
}
 0x511   : > { %s2412_s2 = scalar_lea.hbm %s2897_s29, 16  ;;  %s2416_s25 = scalar_lea.hbm %s2976_s26, 32 }
 0x512   : > { %p2413_p3 = scmp.ne.s32.totalorder %s2897_s29, %s2412_s2  ;;  %p2417_p12 = scmp.lt.s32.totalorder %s2897_s29, %s2976_s26 }
 0x513   : > { %p2418_p10 = scmp.lt.s32.totalorder %s2416_s25, %s2412_s2 }
 0x514   : > { %p2414_p1 = pnand %p2413_p3, %p2602_p5 }
 0x515   : > { %p2419_p4 = por %p2418_p10, %p2417_p12 }
 0x516   : > { %p2415_p2 = pneg %p2414_p1 }
 0x518   : > { %p2420_p9 = pnand %p2419_p4, %p2415_p2 }
 0x51a   : > { %2423 = shalt.err (!%p2420_p9)
}
 0x51b   : > { %2188 = dma.vmem_to_hbm [thread:$0]  (%p2602_p5), %s1887_s23, 16, %s2897_s29, %s1871_s20  }
 0x51c PF: > { %s2977_s27 = sld [smem:[#allocation20_spill]] }
 0x51d   : > { %s2978_s18 = sld [smem:[#allocation18_spill]] }
 0x522   : > { %p2220_p8 = scmp.ge.s32.totalorder %s2977_s27, 2 }
 0x523   : > { %s1905_s24 = sand.u32 1, %s2978_s18  }
 0x524   : > { %p2207_p7 = pnand %p2220_p8, %p2606_p6  ;;  %s1906_s21 = scalar_lea.sflag [#allocation6], %s1905_s24 }
 0x526   : > { %p2208_p11 = pneg %p2207_p7 }
 0x528   : > { %2453 = dma.done.wait (%p2208_p11), %s1906_s21, 16  }
 0x529   : > { %2455 = vsyncadd (%p2208_p11), %s1906_s21, 4294967280  ;;  %s2980_s21 = sld [smem:[#allocation21_spill]]  ;;  %s2983_s18 = smov %s2462_s19 }
 0x52a   : > { %s2981_s2 = sld [smem:[#allocation19_spill]] }
 0x52b   : > { %s2982_s20 = sld [smem:[#allocation22_spill]] }
 0x52f   : > { %p29_p0 = scmp.ge.s32.totalorder %s2980_s21, 4  }
 0x530   : > { %s2984_s19 = smov %s2981_s2 }
 0x531   :  { %31 = sbr.rel (!%p29_p0) target bundleno = 9 (0x9), region = 144 }
 0x536   :  { %1910 = vsyncpa [#allocation5], 1 }
 0x537   :  { %1912 = vsyncpa [#allocation5 + $0x1], 1 }
 0x538   :  { %1913 = vsyncpa [#allocation8], 1 }
 0x539   :  { %1914 = vsyncpa [#allocation11], 1 }
 0x53a   :  { %1915 = vsyncpa [#allocation6], 1 }
 0x53b   :  { %1917 = vsyncpa [#allocation6 + $0x1], 1 }

</bundles_post_ra>
